<compile_context>
chip_gen: v6e
topology: v6e:2x2x1
jax: 0.10.0
libtpu: 0.0.40
codegen_flags: <defaults>
</compile_context>

<pallas_src>
from functools import partial

import numpy as np
import jax
import jax.numpy as jnp
from jax import lax
from jax.experimental import pallas as pl
from jax.experimental.pallas import tpu as pltpu

NEG_SLOPE = 0.2
NP_PAD = 40          # ceil(34 / 8) * 8 — minimal sublane-aligned row padding
MASK_VAL = 1e30


# ---------------------------------------------------------------------------
# Graph construction (karate club, symmetrized) -> dense adjacency mask
# ---------------------------------------------------------------------------
def build_karate_club_adjacency():
    src = np.array([1, 2, 2, 3, 3, 3, 4, 5, 6, 6, 6, 7, 7, 7, 7, 8, 8, 9, 10, 10,
                    10, 11, 12, 12, 13, 13, 13, 13, 16, 16, 17, 17, 19, 19, 21, 21,
                    25, 25, 27, 27, 27, 28, 29, 29, 30, 30, 31, 31, 31, 31, 32, 32,
                    32, 32, 32, 32, 32, 32, 32, 32, 32, 33, 33, 33, 33, 33, 33, 33,
                    33, 33, 33, 33, 33, 33, 33, 33, 33, 33])
    dst = np.array([0, 0, 1, 0, 1, 2, 0, 0, 0, 4, 5, 0, 1, 2, 3, 0, 2, 2, 0, 4,
                    5, 0, 0, 3, 0, 1, 2, 3, 5, 6, 0, 1, 0, 1, 0, 1, 23, 24, 2, 23,
                    24, 2, 23, 26, 1, 8, 0, 24, 25, 28, 2, 8, 14, 15, 18, 20, 22,
                    23, 29, 30, 31, 8, 9, 13, 14, 15, 18, 19, 20, 22, 23, 26, 27,
                    28, 29, 30, 31, 32])
    u = np.concatenate([src, dst])
    v = np.concatenate([dst, src])
    n = int(max(u.max(), v.max())) + 1
    adj = np.zeros((n, n), dtype=np.float32)
    adj[v, u] = 1.0  # adj[dst, src] = 1 for edge src -> dst
    return adj, n


# ---------------------------------------------------------------------------
# Fused Pallas kernel: all GATConv layers in one pass, constants in one slab
# ---------------------------------------------------------------------------
def _gat_fused_kernel(h_ref, slab_ref, out_ref, *, meta, np_pad):
    # h_ref:    (Np, Din0)  padded node features
    # slab_ref: (R, 40)     packed constants:
    #   rows [0, Hmax*Np)           : adjacency bias tiled per head (0 / -1e30)
    #   per layer: W_fold (Din, H*F+H) | W_el^T (8, Din) | head_mask (8, H*F)
    #              | bias row (only if nonzero)
    # out_ref:  (Np, num_classes)   final logits (head mean done in-kernel)
    NP = np_pad
    h = h_ref[...]
    for (din, dout, H, apply_elu, is_last, w_off, wel_off, hm_off,
         has_bias, b_off) in meta:
        HF = H * dout
        # --- one folded matmul: ft (H*F cols) and er (H cols) together ------
        w_fold = slab_ref[w_off:w_off + din, 0:HF + H]            # (Din, HF+H)
        ftf = jnp.dot(h, w_fold, preferred_element_type=jnp.float32)
        ft = ftf[:, 0:HF]                                         # (Np, H*F)
        er = ftf[:, HF:HF + H]                                    # (Np, H)  dst proj
        # --- el straight from h, already (head, node) oriented ---------------
        wel_t = slab_ref[wel_off:wel_off + 8, 0:din]              # (8, Din), rows>=H are 0
        el_t = lax.dot_general(wel_t, h, (((1,), (1,)), ((), ())),
                               preferred_element_type=jnp.float32)  # (8, Np) src proj
        # --- stack heads on the sublane axis ---------------------------------
        blocks = [er[:, hd:hd + 1] + el_t[hd:hd + 1, :] for hd in range(H)]
        e = jnp.concatenate(blocks, axis=0) if H > 1 else blocks[0]  # (H*Np, Np)
        e = jnp.maximum(e, NEG_SLOPE * e)                         # leaky_relu
        e = e + slab_ref[0:H * NP, 0:NP]                          # mask non-edges
        # --- softmax over incoming edges (lane-axis reduce), all heads at once
        m = jnp.max(e, axis=1, keepdims=True)
        p = jnp.exp(e - m)
        denom = jnp.sum(p, axis=1, keepdims=True)                 # >= 1 by construction
        d = jnp.maximum(denom, 1e-30)
        inv = pl.reciprocal(d, approx=True)                       # EUP slot
        inv = inv * (2.0 - d * inv)                               # Newton step -> f32 acc
        # --- one aggregation matmul for all heads -----------------------------
        r = jnp.dot(p, ft, preferred_element_type=jnp.float32)    # (H*Np, H*F)
        r = r * inv
        if is_last:
            # head mean folded in-kernel -> (Np, C) output, no wrapper reshape/mean
            C = dout
            out = r[0:NP, 0:C]
            for hd in range(1, H):
                out = out + r[hd * NP:(hd + 1) * NP, hd * C:(hd + 1) * C]
            out = out * (1.0 / H)
            if has_bias:
                out = out + slab_ref[b_off:b_off + 1, 0:C]        # head-averaged bias
            out_ref[...] = out
        else:
            # recover head-major (Np, H*F) via block-diagonal column mask
            hm = slab_ref[hm_off:hm_off + 8, 0:HF]                # rows >= H are 0
            acc = r[0:NP, :] * hm[0:1, :]
            for hd in range(1, H):
                acc = acc + r[hd * NP:(hd + 1) * NP, :] * hm[hd:hd + 1, :]
            if has_bias:
                acc = acc + slab_ref[b_off:b_off + 1, 0:HF]
            if apply_elu:
                # exp(min(x,0))-1 (proven lowering); expm1 would only change
                # values by ~1e-7 near 0, well within validation tolerance.
                acc = jnp.where(acc > 0, acc,
                                jnp.exp(jnp.minimum(acc, 0.0)) - 1.0)
            h = acc


# ---------------------------------------------------------------------------
# One-time host-side packing of all constants into a single lane-aligned slab
# ---------------------------------------------------------------------------
def _pack_constants(params, layer_cfgs, adj_bias, np_pad):
    h_max = max(cfg[2] for cfg in layer_cfgs)
    lane_w = np_pad                      # 40 columns covers every block here
    blocks, row = [], 0

    def add(arr):
        nonlocal row
        arr = np.asarray(arr, np.float32)
        r, c = arr.shape
        assert c <= lane_w
        rp = ((r + 7) // 8) * 8          # sublane-aligned row offsets
        buf = np.zeros((rp, lane_w), np.float32)
        buf[:r, :c] = arr
        off = row
        blocks.append(buf)
        row += rp
        return off

    add(np.tile(adj_bias, (h_max, 1)))   # rows [0, h_max*np_pad): tiled adj bias
    meta = []
    n_layers = len(params)
    for li, ((w, al, ar, b), (din, dout, H, use_act)) in enumerate(
            zip(params, layer_cfgs)):
        is_last = li == n_layers - 1
        HF = H * dout
        w_np = np.asarray(w, np.float32)
        al_np = np.asarray(al, np.float32)
        ar_np = np.asarray(ar, np.float32)
        b_np = np.asarray(b, np.float32).reshape(-1)
        # fold attn_r / attn_l into the fc weight (host-side, once)
        w_er = np.stack([w_np[:, hd * dout:(hd + 1) * dout] @ ar_np[hd]
                         for hd in range(H)], axis=1)             # (Din, H)
        w_el = np.stack([w_np[:, hd * dout:(hd + 1) * dout] @ al_np[hd]
                         for hd in range(H)], axis=1)             # (Din, H)
        w_off = add(np.concatenate([w_np, w_er], axis=1))         # (Din, HF+H)
        wel_off = add(w_el.T)                                     # (H, Din) -> (8, Din)
        hm_off = -1
        if not is_last:
            hm = np.zeros((H, HF), np.float32)
            for hd in range(H):
                hm[hd, hd * dout:(hd + 1) * dout] = 1.0
            hm_off = add(hm)                                      # (H, HF) -> (8, HF)
        has_bias = bool(np.any(b_np != 0.0))   # static flag, host numpy (jit-safe)
        b_off = -1
        if has_bias:
            if is_last:
                b_off = add(b_np.reshape(H, dout).mean(axis=0, keepdims=True))
            else:
                b_off = add(b_np.reshape(1, HF))
        meta.append((din, dout, H, bool(use_act), is_last,
                     w_off, wel_off, hm_off, has_bias, b_off))
    slab = np.concatenate(blocks, axis=0)
    return jnp.asarray(slab), tuple(meta)


def make_gat_forward(params, layer_cfgs, adj, n_nodes, np_pad=NP_PAD):
    """One-time prepare: pack constants, build pallas_call, return jitted fwd."""
    adj_pad = np.zeros((np_pad, np_pad), np.float32)
    adj_pad[:n_nodes, :n_nodes] = np.asarray(adj, np.float32)
    adj_bias = (adj_pad - 1.0) * MASK_VAL        # 0 on edges, -1e30 on non-edges
    slab, meta = _pack_constants(params, layer_cfgs, adj_bias, np_pad)

    in_dim = layer_cfgs[0][0]
    n_cls = layer_cfgs[-1][1]
    kernel = partial(_gat_fused_kernel, meta=meta, np_pad=np_pad)
    call = pl.pallas_call(
        kernel,
        out_shape=jax.ShapeDtypeStruct((np_pad, n_cls), jnp.float32),
        grid=(1,),
        in_specs=[pl.BlockSpec((np_pad, in_dim), lambda i: (0, 0)),
                  pl.BlockSpec(tuple(slab.shape), lambda i: (0, 0))],
        out_specs=pl.BlockSpec((np_pad, n_cls), lambda i: (0, 0)),
        compiler_params=pltpu.CompilerParams(
            dimension_semantics=("arbitrary",),
            vmem_limit_bytes=32 * 1024 * 1024),
    )

    @jax.jit
    def fwd(x):
        h0 = jnp.zeros((np_pad, in_dim), jnp.float32).at[:x.shape[0], :].set(x)
        return call(h0, slab)[:x.shape[0]]

    return fwd


# ---------------------------------------------------------------------------
# Parameter init (deterministic; DGL-style: bias = zeros)
# ---------------------------------------------------------------------------
def init_params(key, num_layers, in_dim, num_hidden, num_classes, heads):
    layer_cfgs = []
    for l in range(num_layers):
        din = in_dim if l == 0 else num_hidden * heads[l - 1]
        layer_cfgs.append((din, num_hidden, heads[l], True))          # hidden: ELU
    layer_cfgs.append((num_hidden * heads[num_layers - 1], num_classes,
                       heads[num_layers], False))                     # output: no act
    params = []
    for (din, dout, h, _) in layer_cfgs:
        key, k1, k2, k3 = jax.random.split(key, 4)
        w = jax.random.normal(k1, (din, h * dout), jnp.float32) * np.sqrt(
            2.0 / (din + h * dout))
        al = jax.random.normal(k2, (h, dout), jnp.float32) * 0.1
        ar = jax.random.normal(k3, (h, dout), jnp.float32) * 0.1
        b = jnp.zeros((1, h * dout), jnp.float32)   # DGL initializes bias to zeros
        params.append((w, al, ar, b))
    return params, layer_cfgs


# ---------------------------------------------------------------------------
# Pure-JAX reference (dense, unpadded) for validation
# ---------------------------------------------------------------------------
def gat_conv_ref(h, w, al, ar, b, adj, apply_elu):
    n = h.shape[0]
    nh, f = al.shape
    ft = jnp.dot(h, w, precision=jax.lax.Precision.HIGHEST).reshape(n, nh, f)
    el = (ft * al[None]).sum(-1)
    er = (ft * ar[None]).sum(-1)
    e = er[:, None, :] + el[None, :, :]            # e[v, u, h]
    e = jnp.where(e > 0, e, NEG_SLOPE * e)
    e = jnp.where(adj[:, :, None] > 0, e, -jnp.inf)
    a = jax.nn.softmax(e, axis=1)
    rst = jnp.einsum('vuh,uhf->vhf', a, ft, precision=jax.lax.Precision.HIGHEST)
    rst = rst + b.reshape(1, nh, f)
    if apply_elu:
        rst = jax.nn.elu(rst)
    return rst.reshape(n, nh * f)


def gat_forward_ref(x, params, layer_cfgs, adj):
    h = x
    for (w, al, ar, b), (din, dout, nh, use_act) in zip(params, layer_cfgs):
        h = gat_conv_ref(h, w, al, ar, b, adj, use_act)
    h_last, c = layer_cfgs[-1][2], layer_cfgs[-1][1]
    return h.reshape(x.shape[0], h_last, c).mean(axis=1)


# ---------------------------------------------------------------------------
if __name__ == "__main__":
    adj_np, n_nodes = build_karate_club_adjacency()

    num_layers = 2
    in_dim = 16
    num_hidden = 8
    num_classes = 7
    heads = (4, 4, 2)

    key = jax.random.PRNGKey(0)
    key, kx = jax.random.split(key)
    x = jax.random.normal(kx, (n_nodes, in_dim), jnp.float32)
    params, layer_cfgs = init_params(key, num_layers, in_dim, num_hidden,
                                     num_classes, heads)

    fwd = make_gat_forward(params, layer_cfgs, adj_np, n_nodes)
    logits = jax.block_until_ready(fwd(x))

    ref = jax.block_until_ready(
        gat_forward_ref(x, params, layer_cfgs, jnp.asarray(adj_np)))

    assert logits.shape == (n_nodes, num_classes)
    assert np.allclose(np.asarray(logits), np.asarray(ref), rtol=5e-3, atol=5e-3), (
        "Pallas GAT output does not match JAX reference")

    print("KERNEL_OK")
</pallas_src>

<mosaic_0001>
module attributes {stable_mosaic.version = 11 : i64} {
  func.func @_gat_fused_kernel(%arg0: i32, %arg1: memref<40x16xf32, #tpu.memory_space<vmem>>, %arg2: memref<280x40xf32, #tpu.memory_space<vmem>>, %arg3: memref<40x7xf32, #tpu.memory_space<vmem>>) attributes {dimension_semantics = [#tpu.dimension_semantics<arbitrary>], iteration_bounds = array<i64: 1>, scalar_prefetch = 0 : i64, scratch_operands = 0 : i64, tpu.core_type = #tpu.core_type<tc>, window_params = [{pipeline_mode = #tpu.pipeline_mode<synchronous>, transform_indices = @transform_0, window_bounds = array<i64: 40, 16>}, {pipeline_mode = #tpu.pipeline_mode<synchronous>, transform_indices = @transform_1, window_bounds = array<i64: 280, 40>}, {pipeline_mode = #tpu.pipeline_mode<synchronous>, transform_indices = @transform_2, window_bounds = array<i64: 40, 7>}]} {
    %c0 = arith.constant 0 : index
    %c0_0 = arith.constant 0 : index
    %0 = vector.load %arg1[%c0, %c0_0] : memref<40x16xf32, #tpu.memory_space<vmem>>, vector<40x16xf32>
    %c160 = arith.constant 160 : index
    %c0_1 = arith.constant 0 : index
    %1 = vector.load %arg2[%c160, %c0_1] : memref<280x40xf32, #tpu.memory_space<vmem>>, vector<16x36xf32>
    %cst = arith.constant dense<0.000000e+00> : vector<40x36xf32>
    %2 = tpu.matmul %0, %1, %cst {dimension_numbers = #tpu.dot_dimension_numbers<[1], [0], [0], [1], [0, 0, 1, 1], [], []>} : vector<40x16xf32>, vector<16x36xf32>, vector<40x36xf32> -> vector<40x36xf32>
    %3 = vector.extract_strided_slice %2 {offsets = [0, 0], sizes = [40, 32], strides = [1, 1]} : vector<40x36xf32> to vector<40x32xf32>
    %4 = vector.extract_strided_slice %2 {offsets = [0, 32], sizes = [40, 4], strides = [1, 1]} : vector<40x36xf32> to vector<40x4xf32>
    %c176 = arith.constant 176 : index
    %c0_2 = arith.constant 0 : index
    %5 = vector.load %arg2[%c176, %c0_2] : memref<280x40xf32, #tpu.memory_space<vmem>>, vector<8x16xf32>
    %cst_3 = arith.constant dense<0.000000e+00> : vector<8x40xf32>
    %6 = tpu.matmul %5, %0, %cst_3 {dimension_numbers = #tpu.dot_dimension_numbers<[1], [1], [0], [0], [0, 0, 1, 0], [], []>} : vector<8x16xf32>, vector<40x16xf32>, vector<8x40xf32> -> vector<8x40xf32>
    %7 = vector.extract_strided_slice %4 {offsets = [0, 0], sizes = [40, 1], strides = [1, 1]} : vector<40x4xf32> to vector<40x1xf32>
    %8 = vector.extract_strided_slice %6 {offsets = [0, 0], sizes = [1, 40], strides = [1, 1]} : vector<8x40xf32> to vector<1x40xf32>
    %9 = vector.broadcast %7 : vector<40x1xf32> to vector<40x40xf32>
    %10 = vector.broadcast %8 : vector<1x40xf32> to vector<40x40xf32>
    %11 = arith.addf %9, %10 : vector<40x40xf32>
    %12 = vector.extract_strided_slice %4 {offsets = [0, 1], sizes = [40, 1], strides = [1, 1]} : vector<40x4xf32> to vector<40x1xf32>
    %13 = vector.extract_strided_slice %6 {offsets = [1, 0], sizes = [1, 40], strides = [1, 1]} : vector<8x40xf32> to vector<1x40xf32>
    %14 = vector.broadcast %12 : vector<40x1xf32> to vector<40x40xf32>
    %15 = vector.broadcast %13 : vector<1x40xf32> to vector<40x40xf32>
    %16 = arith.addf %14, %15 : vector<40x40xf32>
    %17 = vector.extract_strided_slice %4 {offsets = [0, 2], sizes = [40, 1], strides = [1, 1]} : vector<40x4xf32> to vector<40x1xf32>
    %18 = vector.extract_strided_slice %6 {offsets = [2, 0], sizes = [1, 40], strides = [1, 1]} : vector<8x40xf32> to vector<1x40xf32>
    %19 = vector.broadcast %17 : vector<40x1xf32> to vector<40x40xf32>
    %20 = vector.broadcast %18 : vector<1x40xf32> to vector<40x40xf32>
    %21 = arith.addf %19, %20 : vector<40x40xf32>
    %22 = vector.extract_strided_slice %4 {offsets = [0, 3], sizes = [40, 1], strides = [1, 1]} : vector<40x4xf32> to vector<40x1xf32>
    %23 = vector.extract_strided_slice %6 {offsets = [3, 0], sizes = [1, 40], strides = [1, 1]} : vector<8x40xf32> to vector<1x40xf32>
    %24 = vector.broadcast %22 : vector<40x1xf32> to vector<40x40xf32>
    %25 = vector.broadcast %23 : vector<1x40xf32> to vector<40x40xf32>
    %26 = arith.addf %24, %25 : vector<40x40xf32>
    %27 = tpu.concatenate %11, %16, %21, %26 in 0 : vector<40x40xf32>, vector<40x40xf32>, vector<40x40xf32>, vector<40x40xf32> -> vector<160x40xf32>
    %cst_4 = arith.constant 2.000000e-01 : f32
    %28 = vector.broadcast %cst_4 : f32 to vector<160x40xf32>
    %29 = arith.mulf %28, %27 : vector<160x40xf32>
    %30 = arith.maximumf %27, %29 : vector<160x40xf32>
    %c0_5 = arith.constant 0 : index
    %c0_6 = arith.constant 0 : index
    %31 = vector.load %arg2[%c0_5, %c0_6] : memref<280x40xf32, #tpu.memory_space<vmem>>, vector<160x40xf32>
    %32 = arith.addf %30, %31 : vector<160x40xf32>
    %cst_7 = arith.constant dense<0xFF800000> : vector<160xf32>
    %33 = vector.multi_reduction <maximumf>, %32, %cst_7 [1] : vector<160x40xf32> to vector<160xf32>
    %34 = vector.shape_cast %33 : vector<160xf32> to vector<160x1xf32>
    %35 = vector.broadcast %34 : vector<160x1xf32> to vector<160x40xf32>
    %36 = arith.subf %32, %35 : vector<160x40xf32>
    %37 = math.exp %36 : vector<160x40xf32>
    %cst_8 = arith.constant dense<0.000000e+00> : vector<160xf32>
    %38 = vector.multi_reduction <add>, %37, %cst_8 [1] : vector<160x40xf32> to vector<160xf32>
    %39 = vector.shape_cast %38 : vector<160xf32> to vector<160x1xf32>
    %cst_9 = arith.constant 1.000000e-30 : f32
    %40 = vector.broadcast %cst_9 : f32 to vector<160x1xf32>
    %41 = arith.maximumf %39, %40 : vector<160x1xf32>
    %42 = tpu.reciprocal %41 {approx = true} : vector<160x1xf32> -> vector<160x1xf32>
    %43 = arith.mulf %41, %42 : vector<160x1xf32>
    %cst_10 = arith.constant 2.000000e+00 : f32
    %44 = vector.broadcast %cst_10 : f32 to vector<160x1xf32>
    %45 = arith.subf %44, %43 : vector<160x1xf32>
    %46 = arith.mulf %42, %45 : vector<160x1xf32>
    %cst_11 = arith.constant dense<0.000000e+00> : vector<160x32xf32>
    %47 = tpu.matmul %37, %3, %cst_11 {dimension_numbers = #tpu.dot_dimension_numbers<[1], [0], [0], [1], [0, 0, 1, 1], [], []>} : vector<160x40xf32>, vector<40x32xf32>, vector<160x32xf32> -> vector<160x32xf32>
    %48 = vector.broadcast %46 : vector<160x1xf32> to vector<160x32xf32>
    %49 = arith.mulf %47, %48 : vector<160x32xf32>
    %c184 = arith.constant 184 : index
    %c0_12 = arith.constant 0 : index
    %50 = vector.load %arg2[%c184, %c0_12] : memref<280x40xf32, #tpu.memory_space<vmem>>, vector<8x32xf32>
    %51 = vector.extract_strided_slice %49 {offsets = [0, 0], sizes = [40, 32], strides = [1, 1]} : vector<160x32xf32> to vector<40x32xf32>
    %52 = vector.extract_strided_slice %50 {offsets = [0, 0], sizes = [1, 32], strides = [1, 1]} : vector<8x32xf32> to vector<1x32xf32>
    %53 = vector.broadcast %52 : vector<1x32xf32> to vector<40x32xf32>
    %54 = arith.mulf %51, %53 : vector<40x32xf32>
    %55 = vector.extract_strided_slice %49 {offsets = [40, 0], sizes = [40, 32], strides = [1, 1]} : vector<160x32xf32> to vector<40x32xf32>
    %56 = vector.extract_strided_slice %50 {offsets = [1, 0], sizes = [1, 32], strides = [1, 1]} : vector<8x32xf32> to vector<1x32xf32>
    %57 = vector.broadcast %56 : vector<1x32xf32> to vector<40x32xf32>
    %58 = arith.mulf %55, %57 : vector<40x32xf32>
    %59 = arith.addf %54, %58 : vector<40x32xf32>
    %60 = vector.extract_strided_slice %49 {offsets = [80, 0], sizes = [40, 32], strides = [1, 1]} : vector<160x32xf32> to vector<40x32xf32>
    %61 = vector.extract_strided_slice %50 {offsets = [2, 0], sizes = [1, 32], strides = [1, 1]} : vector<8x32xf32> to vector<1x32xf32>
    %62 = vector.broadcast %61 : vector<1x32xf32> to vector<40x32xf32>
    %63 = arith.mulf %60, %62 : vector<40x32xf32>
    %64 = arith.addf %59, %63 : vector<40x32xf32>
    %65 = vector.extract_strided_slice %49 {offsets = [120, 0], sizes = [40, 32], strides = [1, 1]} : vector<160x32xf32> to vector<40x32xf32>
    %66 = vector.extract_strided_slice %50 {offsets = [3, 0], sizes = [1, 32], strides = [1, 1]} : vector<8x32xf32> to vector<1x32xf32>
    %67 = vector.broadcast %66 : vector<1x32xf32> to vector<40x32xf32>
    %68 = arith.mulf %65, %67 : vector<40x32xf32>
    %69 = arith.addf %64, %68 : vector<40x32xf32>
    %cst_13 = arith.constant 0.000000e+00 : f32
    %70 = vector.broadcast %cst_13 : f32 to vector<40x32xf32>
    %71 = arith.cmpf ogt, %69, %70 : vector<40x32xf32>
    %cst_14 = arith.constant 0.000000e+00 : f32
    %72 = vector.broadcast %cst_14 : f32 to vector<40x32xf32>
    %73 = arith.minimumf %69, %72 : vector<40x32xf32>
    %74 = math.exp %73 : vector<40x32xf32>
    %cst_15 = arith.constant 1.000000e+00 : f32
    %75 = vector.broadcast %cst_15 : f32 to vector<40x32xf32>
    %76 = arith.subf %74, %75 : vector<40x32xf32>
    %77 = arith.select %71, %69, %76 : vector<40x32xi1>, vector<40x32xf32>
    %c192 = arith.constant 192 : index
    %c0_16 = arith.constant 0 : index
    %78 = vector.load %arg2[%c192, %c0_16] : memref<280x40xf32, #tpu.memory_space<vmem>>, vector<32x36xf32>
    %cst_17 = arith.constant dense<0.000000e+00> : vector<40x36xf32>
    %79 = tpu.matmul %77, %78, %cst_17 {dimension_numbers = #tpu.dot_dimension_numbers<[1], [0], [0], [1], [0, 0, 1, 1], [], []>} : vector<40x32xf32>, vector<32x36xf32>, vector<40x36xf32> -> vector<40x36xf32>
    %80 = vector.extract_strided_slice %79 {offsets = [0, 0], sizes = [40, 32], strides = [1, 1]} : vector<40x36xf32> to vector<40x32xf32>
    %81 = vector.extract_strided_slice %79 {offsets = [0, 32], sizes = [40, 4], strides = [1, 1]} : vector<40x36xf32> to vector<40x4xf32>
    %c224 = arith.constant 224 : index
    %c0_18 = arith.constant 0 : index
    %82 = vector.load %arg2[%c224, %c0_18] : memref<280x40xf32, #tpu.memory_space<vmem>>, vector<8x32xf32>
    %cst_19 = arith.constant dense<0.000000e+00> : vector<8x40xf32>
    %83 = tpu.matmul %82, %77, %cst_19 {dimension_numbers = #tpu.dot_dimension_numbers<[1], [1], [0], [0], [0, 0, 1, 0], [], []>} : vector<8x32xf32>, vector<40x32xf32>, vector<8x40xf32> -> vector<8x40xf32>
    %84 = vector.extract_strided_slice %81 {offsets = [0, 0], sizes = [40, 1], strides = [1, 1]} : vector<40x4xf32> to vector<40x1xf32>
    %85 = vector.extract_strided_slice %83 {offsets = [0, 0], sizes = [1, 40], strides = [1, 1]} : vector<8x40xf32> to vector<1x40xf32>
    %86 = vector.broadcast %84 : vector<40x1xf32> to vector<40x40xf32>
    %87 = vector.broadcast %85 : vector<1x40xf32> to vector<40x40xf32>
    %88 = arith.addf %86, %87 : vector<40x40xf32>
    %89 = vector.extract_strided_slice %81 {offsets = [0, 1], sizes = [40, 1], strides = [1, 1]} : vector<40x4xf32> to vector<40x1xf32>
    %90 = vector.extract_strided_slice %83 {offsets = [1, 0], sizes = [1, 40], strides = [1, 1]} : vector<8x40xf32> to vector<1x40xf32>
    %91 = vector.broadcast %89 : vector<40x1xf32> to vector<40x40xf32>
    %92 = vector.broadcast %90 : vector<1x40xf32> to vector<40x40xf32>
    %93 = arith.addf %91, %92 : vector<40x40xf32>
    %94 = vector.extract_strided_slice %81 {offsets = [0, 2], sizes = [40, 1], strides = [1, 1]} : vector<40x4xf32> to vector<40x1xf32>
    %95 = vector.extract_strided_slice %83 {offsets = [2, 0], sizes = [1, 40], strides = [1, 1]} : vector<8x40xf32> to vector<1x40xf32>
    %96 = vector.broadcast %94 : vector<40x1xf32> to vector<40x40xf32>
    %97 = vector.broadcast %95 : vector<1x40xf32> to vector<40x40xf32>
    %98 = arith.addf %96, %97 : vector<40x40xf32>
    %99 = vector.extract_strided_slice %81 {offsets = [0, 3], sizes = [40, 1], strides = [1, 1]} : vector<40x4xf32> to vector<40x1xf32>
    %100 = vector.extract_strided_slice %83 {offsets = [3, 0], sizes = [1, 40], strides = [1, 1]} : vector<8x40xf32> to vector<1x40xf32>
    %101 = vector.broadcast %99 : vector<40x1xf32> to vector<40x40xf32>
    %102 = vector.broadcast %100 : vector<1x40xf32> to vector<40x40xf32>
    %103 = arith.addf %101, %102 : vector<40x40xf32>
    %104 = tpu.concatenate %88, %93, %98, %103 in 0 : vector<40x40xf32>, vector<40x40xf32>, vector<40x40xf32>, vector<40x40xf32> -> vector<160x40xf32>
    %cst_20 = arith.constant 2.000000e-01 : f32
    %105 = vector.broadcast %cst_20 : f32 to vector<160x40xf32>
    %106 = arith.mulf %105, %104 : vector<160x40xf32>
    %107 = arith.maximumf %104, %106 : vector<160x40xf32>
    %c0_21 = arith.constant 0 : index
    %c0_22 = arith.constant 0 : index
    %108 = vector.load %arg2[%c0_21, %c0_22] : memref<280x40xf32, #tpu.memory_space<vmem>>, vector<160x40xf32>
    %109 = arith.addf %107, %108 : vector<160x40xf32>
    %cst_23 = arith.constant dense<0xFF800000> : vector<160xf32>
    %110 = vector.multi_reduction <maximumf>, %109, %cst_23 [1] : vector<160x40xf32> to vector<160xf32>
    %111 = vector.shape_cast %110 : vector<160xf32> to vector<160x1xf32>
    %112 = vector.broadcast %111 : vector<160x1xf32> to vector<160x40xf32>
    %113 = arith.subf %109, %112 : vector<160x40xf32>
    %114 = math.exp %113 : vector<160x40xf32>
    %cst_24 = arith.constant dense<0.000000e+00> : vector<160xf32>
    %115 = vector.multi_reduction <add>, %114, %cst_24 [1] : vector<160x40xf32> to vector<160xf32>
    %116 = vector.shape_cast %115 : vector<160xf32> to vector<160x1xf32>
    %cst_25 = arith.constant 1.000000e-30 : f32
    %117 = vector.broadcast %cst_25 : f32 to vector<160x1xf32>
    %118 = arith.maximumf %116, %117 : vector<160x1xf32>
    %119 = tpu.reciprocal %118 {approx = true} : vector<160x1xf32> -> vector<160x1xf32>
    %120 = arith.mulf %118, %119 : vector<160x1xf32>
    %cst_26 = arith.constant 2.000000e+00 : f32
    %121 = vector.broadcast %cst_26 : f32 to vector<160x1xf32>
    %122 = arith.subf %121, %120 : vector<160x1xf32>
    %123 = arith.mulf %119, %122 : vector<160x1xf32>
    %cst_27 = arith.constant dense<0.000000e+00> : vector<160x32xf32>
    %124 = tpu.matmul %114, %80, %cst_27 {dimension_numbers = #tpu.dot_dimension_numbers<[1], [0], [0], [1], [0, 0, 1, 1], [], []>} : vector<160x40xf32>, vector<40x32xf32>, vector<160x32xf32> -> vector<160x32xf32>
    %125 = vector.broadcast %123 : vector<160x1xf32> to vector<160x32xf32>
    %126 = arith.mulf %124, %125 : vector<160x32xf32>
    %c232 = arith.constant 232 : index
    %c0_28 = arith.constant 0 : index
    %127 = vector.load %arg2[%c232, %c0_28] : memref<280x40xf32, #tpu.memory_space<vmem>>, vector<8x32xf32>
    %128 = vector.extract_strided_slice %126 {offsets = [0, 0], sizes = [40, 32], strides = [1, 1]} : vector<160x32xf32> to vector<40x32xf32>
    %129 = vector.extract_strided_slice %127 {offsets = [0, 0], sizes = [1, 32], strides = [1, 1]} : vector<8x32xf32> to vector<1x32xf32>
    %130 = vector.broadcast %129 : vector<1x32xf32> to vector<40x32xf32>
    %131 = arith.mulf %128, %130 : vector<40x32xf32>
    %132 = vector.extract_strided_slice %126 {offsets = [40, 0], sizes = [40, 32], strides = [1, 1]} : vector<160x32xf32> to vector<40x32xf32>
    %133 = vector.extract_strided_slice %127 {offsets = [1, 0], sizes = [1, 32], strides = [1, 1]} : vector<8x32xf32> to vector<1x32xf32>
    %134 = vector.broadcast %133 : vector<1x32xf32> to vector<40x32xf32>
    %135 = arith.mulf %132, %134 : vector<40x32xf32>
    %136 = arith.addf %131, %135 : vector<40x32xf32>
    %137 = vector.extract_strided_slice %126 {offsets = [80, 0], sizes = [40, 32], strides = [1, 1]} : vector<160x32xf32> to vector<40x32xf32>
    %138 = vector.extract_strided_slice %127 {offsets = [2, 0], sizes = [1, 32], strides = [1, 1]} : vector<8x32xf32> to vector<1x32xf32>
    %139 = vector.broadcast %138 : vector<1x32xf32> to vector<40x32xf32>
    %140 = arith.mulf %137, %139 : vector<40x32xf32>
    %141 = arith.addf %136, %140 : vector<40x32xf32>
    %142 = vector.extract_strided_slice %126 {offsets = [120, 0], sizes = [40, 32], strides = [1, 1]} : vector<160x32xf32> to vector<40x32xf32>
    %143 = vector.extract_strided_slice %127 {offsets = [3, 0], sizes = [1, 32], strides = [1, 1]} : vector<8x32xf32> to vector<1x32xf32>
    %144 = vector.broadcast %143 : vector<1x32xf32> to vector<40x32xf32>
    %145 = arith.mulf %142, %144 : vector<40x32xf32>
    %146 = arith.addf %141, %145 : vector<40x32xf32>
    %cst_29 = arith.constant 0.000000e+00 : f32
    %147 = vector.broadcast %cst_29 : f32 to vector<40x32xf32>
    %148 = arith.cmpf ogt, %146, %147 : vector<40x32xf32>
    %cst_30 = arith.constant 0.000000e+00 : f32
    %149 = vector.broadcast %cst_30 : f32 to vector<40x32xf32>
    %150 = arith.minimumf %146, %149 : vector<40x32xf32>
    %151 = math.exp %150 : vector<40x32xf32>
    %cst_31 = arith.constant 1.000000e+00 : f32
    %152 = vector.broadcast %cst_31 : f32 to vector<40x32xf32>
    %153 = arith.subf %151, %152 : vector<40x32xf32>
    %154 = arith.select %148, %146, %153 : vector<40x32xi1>, vector<40x32xf32>
    %c240 = arith.constant 240 : index
    %c0_32 = arith.constant 0 : index
    %155 = vector.load %arg2[%c240, %c0_32] : memref<280x40xf32, #tpu.memory_space<vmem>>, vector<32x16xf32>
    %cst_33 = arith.constant dense<0.000000e+00> : vector<40x16xf32>
    %156 = tpu.matmul %154, %155, %cst_33 {dimension_numbers = #tpu.dot_dimension_numbers<[1], [0], [0], [1], [0, 0, 1, 1], [], []>} : vector<40x32xf32>, vector<32x16xf32>, vector<40x16xf32> -> vector<40x16xf32>
    %157 = vector.extract_strided_slice %156 {offsets = [0, 0], sizes = [40, 14], strides = [1, 1]} : vector<40x16xf32> to vector<40x14xf32>
    %158 = vector.extract_strided_slice %156 {offsets = [0, 14], sizes = [40, 2], strides = [1, 1]} : vector<40x16xf32> to vector<40x2xf32>
    %c272 = arith.constant 272 : index
    %c0_34 = arith.constant 0 : index
    %159 = vector.load %arg2[%c272, %c0_34] : memref<280x40xf32, #tpu.memory_space<vmem>>, vector<8x32xf32>
    %cst_35 = arith.constant dense<0.000000e+00> : vector<8x40xf32>
    %160 = tpu.matmul %159, %154, %cst_35 {dimension_numbers = #tpu.dot_dimension_numbers<[1], [1], [0], [0], [0, 0, 1, 0], [], []>} : vector<8x32xf32>, vector<40x32xf32>, vector<8x40xf32> -> vector<8x40xf32>
    %161 = vector.extract_strided_slice %158 {offsets = [0, 0], sizes = [40, 1], strides = [1, 1]} : vector<40x2xf32> to vector<40x1xf32>
    %162 = vector.extract_strided_slice %160 {offsets = [0, 0], sizes = [1, 40], strides = [1, 1]} : vector<8x40xf32> to vector<1x40xf32>
    %163 = vector.broadcast %161 : vector<40x1xf32> to vector<40x40xf32>
    %164 = vector.broadcast %162 : vector<1x40xf32> to vector<40x40xf32>
    %165 = arith.addf %163, %164 : vector<40x40xf32>
    %166 = vector.extract_strided_slice %158 {offsets = [0, 1], sizes = [40, 1], strides = [1, 1]} : vector<40x2xf32> to vector<40x1xf32>
    %167 = vector.extract_strided_slice %160 {offsets = [1, 0], sizes = [1, 40], strides = [1, 1]} : vector<8x40xf32> to vector<1x40xf32>
    %168 = vector.broadcast %166 : vector<40x1xf32> to vector<40x40xf32>
    %169 = vector.broadcast %167 : vector<1x40xf32> to vector<40x40xf32>
    %170 = arith.addf %168, %169 : vector<40x40xf32>
    %171 = tpu.concatenate %165, %170 in 0 : vector<40x40xf32>, vector<40x40xf32> -> vector<80x40xf32>
    %cst_36 = arith.constant 2.000000e-01 : f32
    %172 = vector.broadcast %cst_36 : f32 to vector<80x40xf32>
    %173 = arith.mulf %172, %171 : vector<80x40xf32>
    %174 = arith.maximumf %171, %173 : vector<80x40xf32>
    %c0_37 = arith.constant 0 : index
    %c0_38 = arith.constant 0 : index
    %175 = vector.load %arg2[%c0_37, %c0_38] : memref<280x40xf32, #tpu.memory_space<vmem>>, vector<80x40xf32>
    %176 = arith.addf %174, %175 : vector<80x40xf32>
    %cst_39 = arith.constant dense<0xFF800000> : vector<80xf32>
    %177 = vector.multi_reduction <maximumf>, %176, %cst_39 [1] : vector<80x40xf32> to vector<80xf32>
    %178 = vector.shape_cast %177 : vector<80xf32> to vector<80x1xf32>
    %179 = vector.broadcast %178 : vector<80x1xf32> to vector<80x40xf32>
    %180 = arith.subf %176, %179 : vector<80x40xf32>
    %181 = math.exp %180 : vector<80x40xf32>
    %cst_40 = arith.constant dense<0.000000e+00> : vector<80xf32>
    %182 = vector.multi_reduction <add>, %181, %cst_40 [1] : vector<80x40xf32> to vector<80xf32>
    %183 = vector.shape_cast %182 : vector<80xf32> to vector<80x1xf32>
    %cst_41 = arith.constant 1.000000e-30 : f32
    %184 = vector.broadcast %cst_41 : f32 to vector<80x1xf32>
    %185 = arith.maximumf %183, %184 : vector<80x1xf32>
    %186 = tpu.reciprocal %185 {approx = true} : vector<80x1xf32> -> vector<80x1xf32>
    %187 = arith.mulf %185, %186 : vector<80x1xf32>
    %cst_42 = arith.constant 2.000000e+00 : f32
    %188 = vector.broadcast %cst_42 : f32 to vector<80x1xf32>
    %189 = arith.subf %188, %187 : vector<80x1xf32>
    %190 = arith.mulf %186, %189 : vector<80x1xf32>
    %cst_43 = arith.constant dense<0.000000e+00> : vector<80x14xf32>
    %191 = tpu.matmul %181, %157, %cst_43 {dimension_numbers = #tpu.dot_dimension_numbers<[1], [0], [0], [1], [0, 0, 1, 1], [], []>} : vector<80x40xf32>, vector<40x14xf32>, vector<80x14xf32> -> vector<80x14xf32>
    %192 = vector.broadcast %190 : vector<80x1xf32> to vector<80x14xf32>
    %193 = arith.mulf %191, %192 : vector<80x14xf32>
    %194 = vector.extract_strided_slice %193 {offsets = [0, 0], sizes = [40, 7], strides = [1, 1]} : vector<80x14xf32> to vector<40x7xf32>
    %195 = vector.extract_strided_slice %193 {offsets = [40, 7], sizes = [40, 7], strides = [1, 1]} : vector<80x14xf32> to vector<40x7xf32>
    %196 = arith.addf %194, %195 : vector<40x7xf32>
    %cst_44 = arith.constant 5.000000e-01 : f32
    %197 = vector.broadcast %cst_44 : f32 to vector<40x7xf32>
    %198 = arith.mulf %196, %197 : vector<40x7xf32>
    %c0_45 = arith.constant 0 : index
    %c0_46 = arith.constant 0 : index
    %199 = vector.load %arg3[%c0_45, %c0_46] : memref<40x7xf32, #tpu.memory_space<vmem>>, vector<40x7xf32>
    tpu.vector_store %arg3[%c0_45, %c0_46], %198 {strides = array<i32>} : memref<40x7xf32, #tpu.memory_space<vmem>>, vector<40x7xf32>,
    return
  }
  func.func @transform_0(%arg0: i32) -> (i32, i32) {
    %c0_i32 = arith.constant 0 : i32
    %c0_i32_0 = arith.constant 0 : i32
    %c0_i32_1 = arith.constant 0 : i32
    return %c0_i32, %c0_i32_0 : i32, i32
  }
  func.func @transform_1(%arg0: i32) -> (i32, i32) {
    %c0_i32 = arith.constant 0 : i32
    %c0_i32_0 = arith.constant 0 : i32
    %c0_i32_1 = arith.constant 0 : i32
    return %c0_i32, %c0_i32_0 : i32, i32
  }
  func.func @transform_2(%arg0: i32) -> (i32, i32) {
    %c0_i32 = arith.constant 0 : i32
    %c0_i32_0 = arith.constant 0 : i32
    %c0_i32_1 = arith.constant 0 : i32
    return %c0_i32, %c0_i32_0 : i32, i32
  }
}

</mosaic_0001>

<bundles_post_ra>
// kernel: fwd.1
= control target key start
LH: loop header
LB: loop body
LE: loop exit
PB: predicated region body
PF: predicated region fallthrough
CT: control target
= control target key end

     0   :  { %7 = vsyncpa [#allocation3], 0  ;;  %s3331_s9 = smov [#allocation2]   ;;  %s4340_s0 = inlined_call_operand.vmem [shape: f32[40,16], index: 0, kind: input, shape index: {}]   ;;  %s4341_s1 = inlined_call_operand.hbm [shape: f32[280,40], index: 1, kind: input, shape index: {}]   ;;  %s4342_s2 = inlined_call_operand.vmem [shape: f32[40,7], index: 2, kind: output, shape index: {}]  }
   0x1   :  { %s15_s10 = sshll.u32 %s3331_s9, 4  ;;  %s16_s10 = int_to_ptr.vmem [resolvable:$true] %s15_s10 }
   0x2   :  { %s3317_s11 = scalar_lea.vmem %s16_s10, 4480  ;;  %p3322_p1 = scmp.lt.s32.totalorder %s16_s10, %s16_s10 }
   0x3   :  { %p3318_p0 = scmp.ne.s32.totalorder %s16_s10, %s3317_s11  ;;  %p3323_p2 = scmp.lt.s32.totalorder %s3317_s11, %s3317_s11 }
   0x5   :  { %p3324_p3 = por %p3323_p2, %p3322_p1 }
   0x7   :  { %p3325_p4 = pnand %p3324_p3, %p3318_p0 }
   0x9   :  { %3328 = shalt.err (!%p3325_p4)
}
   0xa   :  { %s3332_s12 = smov 128   ;;  %s3333_s13 = smov 8  }
   0xb   :  { %21 = dma.hbm_to_vmem [thread:$0]  %s4341_s1, 4480, %s16_s10, [#allocation3], %s3332_s12, %s3332_s12, %s3333_s13  }
   0xc   :  { %3329 = dma.done.wait [#allocation3], 4480  }
   0xd   :  { %3330 = vsyncadd [#allocation3], 4294962816  ;;  %v4351_v0 = vmov 0.0   ;;  %vm3335_vm0 = vmmov 0   ;;  %v4345_v1 = vmov 33   ;;  %v31_v2 = vld [vmem:[#allocation2 + $0xa8] sm:$0xff]  ;;  %v237_v25 = vlaneseq }
   0xe   :  { %2816 = vmatprep.subr.mxu1 %v4351_v0  ;;  %2820 = vmatprep.mubr.msk.f32.mxu1 %vm3335_vm0, %v4351_v0  ;;  %v30_v3 = vld [vmem:[#allocation2 + $0xa0] sm:$0xff]  ;;  %vm32_vm1 = vcmask 130048   ;;  %v26_v6 = vld [vmem:[%s4340_s0 + $0x8] sm:$0xff]  ;;  %v28_v7 = vld [vmem:[%s4340_s0 + $0x18] sm:$0xff]  ;;  %v4349_v13 = vmov 32   ;;  %v4347_v16 = vmov 34  }
   0xf   :  { %3037 = vset.pattern.permute.xlu1 %v4345_v1  ;;  %3038 = vset.pattern.permute.xlu0 %v4345_v1  ;;  %v25_v4 = vld [vmem:[%s4340_s0] sm:$0xff]  ;;  %v27_v8 = vld [vmem:[%s4340_s0 + $0x10] sm:$0xff]  ;;  %v4343_v19 = vmov 35   ;;  %v3426_v28 = vshrl.u32 %v237_v25, 7  ;;  %v376_v55 = vld [vmem:[#allocation2 + $0x18] sm:$0xff]  ;;  %vm413_vm2 = vcmask 326656  }
  0x10   :  { %2817 = vmatpush3.msra.mxu1 %v31_v2  ;;  %v29_v5 = vld [vmem:[%s4340_s0 + $0x20] sm:$0xff]  ;;  %v138_v9 = vld [vmem:[#allocation2 + $0xb0] sm:$0xff]  ;;  %v374_v2 = vld [vmem:[#allocation2 + $0x8] sm:$0xff]  ;;  %vm1025_vm3 = vcmask 261120   ;;  %s3342_s0 = smov 121   ;;  %vm2604_vm14 = vcmask 56320  }
  0x11   :  { %2818 = vmatprep.subr.mxu1 %v4351_v0  ;;  %v3429_v29 = vsub.s32 0, %v3426_v28  ;;  %v3434_v33 = vsub.s32 1, %v3426_v28  ;;  %v3441_v45 = vsub.s32 2, %v3426_v28  ;;  %v373_v51 = vld [vmem:[#allocation2] sm:$0xff] }
  0x12   :  { %2819 = vmatpush3.msra.mxu1 %v30_v3 }
  0x13   :  { %2821 = vmatmul.mubr.msk.f32.vlgmr.msra.gmra.mxu1 %vm32_vm1, %v25_v4  ;;  %2835 = vmatprep.subr.mxu1 %v4351_v0  ;;  %4376 = vst [vmem:[#allocation5_spill] sm:$0xff] %v3434_v33  ;;  %4377 = vst [vmem:[#allocation6_spill] sm:$0xff] %v3441_v45 }
  0x14   :  { %2823 = vmatprep.mubr.msk.f32.mxu1 %vm3335_vm0, %v4351_v0  ;;  %2836 = vmatpush3.xpose.msk.msra.mxu1 %vm32_vm1, %v29_v5 }
  0x15   :  { %2837 = vmatprep.subr.mxu1 %v4351_v0 }
  0x17   :  { %2824 = vmatmul.mubr.msk.f32.gmra.mxu1 %vm32_vm1, %v26_v6 }
  0x18   :  { %2826 = vmatprep.mubr.msk.f32.mxu1 %vm3335_vm0, %v4351_v0  ;;  %2838 = vmatpush3.xpose.msk.msra.mxu1 %vm32_vm1, %v28_v7 }
  0x19   :  { %2839 = vmatprep.subr.mxu1 %v4351_v0 }
  0x1b   :  { %2827 = vmatmul.mubr.msk.f32.gmra.mxu1 %vm32_vm1, %v27_v8 }
  0x1c   :  { %2829 = vmatprep.mubr.msk.f32.mxu1 %vm3335_vm0, %v4351_v0  ;;  %2840 = vmatpush3.xpose.msk.msra.mxu1 %vm32_vm1, %v27_v8  ;;  %v375_v8 = vld [vmem:[#allocation2 + $0x10] sm:$0xff] }
  0x1d   :  { %2841 = vmatprep.subr.mxu1 %v4351_v0 }
  0x1f   :  { %2830 = vmatmul.mubr.msk.f32.gmra.mxu1 %vm32_vm1, %v28_v7 }
  0x20   :  { %2832 = vmatprep.mubr.msk.f32.mxu1 %vm3335_vm0, %v4351_v0  ;;  %2842 = vmatpush3.xpose.msk.msra.mxu1 %vm32_vm1, %v26_v6 }
  0x21   :  { %2843 = vmatprep.subr.mxu1 %v4351_v0 }
  0x23   :  { %2833 = vmatmul.mubr.msk.f32.gmra.mxu1 %vm32_vm1, %v29_v5 }
  0x24   :  { %2844 = vmatpush3.xpose.msk.msra.mxu1 %vm32_vm1, %v25_v4  ;;  %2845 = vmatprep.mubr.msk.f32.mxu1 %vm3335_vm0, %v4351_v0 }
  0x25   :  { %2888 = vmatprep.subr.mxu1 %v4351_v0 }
  0x27   :  { %2846 = vmatmul.mubr.msk.f32.vlgmr.msra.gmra.mxu1 %vm32_vm1, %v138_v9  ;;  %v378_v9 = vld [vmem:[#allocation2 + $0x28] sm:$0xff] }
  0x28   :  { %2896 = vmatprep.mubr.msk.f32.mxu1 %vm3335_vm0, %v4351_v0 }
  0xd3   :  { %v114_v10 = vpop.f32.mrf.mxu1 }
  0xd4   :  { %247 = vperm.xlu1 %3037, %v114_v10  }
  0xd5   :  { %v2822_v11 = vpop.f32.mrf.mxu1 }
  0xd7   :  { %v119_v12 = vpop.f32.mrf.mxu1 }
  0xd8   :  { %251 = vperm.xlu0 %3038, %v119_v12   ;;  %3039 = vset.pattern.permute.xlu1 %v4349_v13 }
  0xd9   :  { %v2825_v14 = vpop.f32.mrf.mxu1 }
  0xdb   :  { %v124_v15 = vpop.f32.mrf.mxu1 }
  0xdc   :  { %3042 = vset.pattern.permute.xlu0 %v4347_v16  ;;  %224 = vperm.xlu1 %3039, %v124_v15  }
  0xdd   :  { %280 = vperm.xlu0 %3042, %v119_v12   ;;  %v2828_v17 = vpop.f32.mrf.mxu1 }
  0xdf   :  { %v129_v18 = vpop.f32.mrf.mxu1 }
  0xe0   :  { %229 = vperm.xlu1 %3039, %v129_v18  }
  0xe1   :  { %3044 = vset.pattern.permute.xlu0 %v4343_v19  ;;  %v2831_v20 = vpop.f32.mrf.mxu1 }
  0xe2   :  { %309 = vperm.xlu0 %3044, %v119_v12  }
  0xe3   :  { %v134_v21 = vpop.f32.mrf.mxu1 }
  0xe4   :  { %3040 = vset.pattern.permute.xlu1 %v4345_v1  ;;  %2848 = vmatprep.subr.mxu0 %v134_v21 }
  0xe5   :  { %255 = vperm.xlu1 %3040, %v124_v15   ;;  %2849 = vmatpush3.msra.mxu0 %v134_v21  ;;  %v2834_v22 = vpop.f32.mrf.mxu1 }
  0xe6   :  { %3045 = vset.pattern.permute.xlu0 %v4349_v13  ;;  %2850 = vmatprep.subr.mxu0 %v129_v18 }
  0xe7   :  { %214 = vperm.xlu0 %3045, %v114_v10   ;;  %2851 = vmatpush3.msra.mxu0 %v129_v18  ;;  %v3416_v23 = vpop.f32.mrf.mxu1 }
  0xe8   :  { %2852 = vmatprep.subr.mxu0 %v124_v15  ;;  %v240_v32 = vrot.slane %v3416_v23, %v3429_v29  ;;  %v269_v36 = vrot.slane %v3416_v23, %v3434_v33  ;;  %v3445_v56 = vrot.slane %v3416_v23, %v3441_v45 }
  0xe9   :  { %259 = vperm.xlu1 %3040, %v129_v18   ;;  %2853 = vmatpush3.msra.mxu0 %v124_v15  ;;  %v2847_v24 = vpop.f32.mrf.mxu1 }
  0xea   :  { %2854 = vmatprep.subr.mxu0 %v119_v12 }
  0xeb   :  { %219 = vperm.xlu0 %3045, %v119_v12   ;;  %2855 = vmatpush3.msra.mxu0 %v119_v12 }
  0xec   :  { %2856 = vmatprep.subr.mxu0 %v114_v10 }
  0xed   :  { %3041 = vset.pattern.permute.xlu1 %v4347_v16  ;;  %2857 = vmatpush3.msra.mxu0 %v114_v10 }
  0xee   :  { %276 = vperm.xlu1 %3041, %v114_v10   ;;  %2964 = vmatprep.subr.mxu0 %v4351_v0 }
  0xef   :  { %234 = vperm.xlu0 %3045, %v134_v21  }
  0xf2   :  { %284 = vperm.xlu1 %3041, %v124_v15  }
  0xf3   :  { %3046 = vset.pattern.permute.xlu0 %v4345_v1 }
  0xf4   :  { %263 = vperm.xlu0 %3046, %v134_v21  }
  0xf6   :  { %288 = vperm.xlu1 %3041, %v129_v18  }
  0xf8   :  { %3047 = vset.pattern.permute.xlu0 %v4347_v16 }
  0xf9   :  { %292 = vperm.xlu0 %3047, %v134_v21  }
  0xfa   :  { %3043 = vset.pattern.permute.xlu1 %v4343_v19 }
  0xfb   :  { %305 = vperm.xlu1 %3043, %v114_v10  }
  0xfd   :  { %3048 = vset.pattern.permute.xlu0 %v4343_v19 }
  0xfe   :  { %321 = vperm.xlu0 %3048, %v134_v21  }
  0xff   :  { %313 = vperm.xlu1 %3043, %v124_v15  }
 0x102   :  { %3049 = vset.pattern.permute.xlu0 %v4349_v13 }
 0x103   :  { %317 = vperm.xlu1 %3043, %v129_v18  }
 0x107   :  { %3050 = vset.pattern.permute.xlu1 %v4345_v1 }
 0x14f   :  { %v248_v26 = vpop.permute.xlu1 %247 }
 0x150   :  { %v270_v39 = vadd.f32 %v269_v36, %v248_v26 }
 0x152   :  { %v338_v47 = vmul.f32 0.2, %v270_v39 }
 0x153   :  { %v252_v27 = vpop.permute.xlu0 %251 }
 0x154   :  { %v271_v57 = vadd.f32 %v269_v36, %v252_v27  ;;  %v358_v61 = vmax.f32 %v270_v39, %v338_v47 }
 0x156   :  { %v339_v10 = vmul.f32 0.2, %v271_v57  ;;  %v3458_v20 = vadd.f32 %v378_v9, %v358_v61 }
 0x157   :  { %v225_v30 = vpop.permute.xlu1 %224 }
 0x158   :  { %v281_v31 = vpop.permute.xlu0 %280  ;;  %v243_v40 = vadd.f32 %v240_v32, %v225_v30  ;;  %v377_v30 = vld [vmem:[#allocation2 + $0x20] sm:$0xff] }
 0x159   :  { %v300_v11 = vadd.f32 %v3445_v56, %v281_v31  ;;  %v380_v31 = vld [vmem:[#allocation2 + $0x38] sm:$0xff] }
 0x15a   :  { %v335_v48 = vmul.f32 0.2, %v243_v40 }
 0x15b   :  { %v230_v34 = vpop.permute.xlu1 %229 }
 0x15c   :  { %v244_v37 = vadd.f32 %v240_v32, %v230_v34  ;;  %v355_v62 = vmax.f32 %v243_v40, %v335_v48  ;;  %v359_v34 = vmax.f32 %v271_v57, %v339_v10  ;;  %v382_v48 = vld [vmem:[#allocation2 + $0x48] sm:$0xff] }
 0x15d   :  { %v3436_v35 = vpop.permute.xlu0 %309 }
 0x15e   :  { %v336_v41 = vmul.f32 0.2, %v244_v37  ;;  %v3456_v18 = vadd.f32 %v375_v8, %v355_v62 }
 0x160   :  { %v256_v38 = vpop.permute.xlu1 %255  ;;  %v356_v49 = vmax.f32 %v244_v37, %v336_v41  ;;  %v344_v37 = vmul.f32 0.2, %v300_v11 }
 0x161   :  { %v272_v52 = vadd.f32 %v269_v36, %v256_v38 }
 0x162   :  { %v215_v42 = vpop.permute.xlu0 %214  ;;  %v3449_v3 = vadd.f32 %v376_v55, %v356_v49 }
 0x163   :  { %v241_v43 = vadd.f32 %v240_v32, %v215_v42  ;;  %v340_v4 = vmul.f32 0.2, %v272_v52 }
 0x164   :  { %v260_v44 = vpop.permute.xlu1 %259  ;;  %v423_v26 = vsel %vm413_vm2, %v3449_v3, -inf }
 0x165   :  { %v333_v46 = vmul.f32 0.2, %v241_v43  ;;  %v273_v17 = vadd.f32 %v269_v36, %v260_v44  ;;  %v360_v21 = vmax.f32 %v272_v52, %v340_v4  ;;  %v429_v44 = vsel %vm413_vm2, %v3458_v20, -inf }
 0x166   :  { %v220_v50 = vpop.permute.xlu0 %219 }
 0x167   :  { %v353_v53 = vmax.f32 %v241_v43, %v333_v46  ;;  %v242_v54 = vadd.f32 %v240_v32, %v220_v50  ;;  %v341_v39 = vmul.f32 0.2, %v273_v17  ;;  %v379_v43 = vld [vmem:[#allocation2 + $0x30] sm:$0xff]  ;;  %v364_v50 = vmax.f32 %v300_v11, %v344_v37 }
 0x169   :  { %v334_v58 = vmul.f32 0.2, %v242_v54  ;;  %v277_v59 = vpop.permute.xlu1 %276  ;;  %v3447_v60 = vadd.f32 %v373_v51, %v353_v53  ;;  %v3479_v51 = vadd.f32 %v379_v43, %v359_v34  ;;  %v361_v52 = vmax.f32 %v273_v17, %v341_v39 }
 0x16a   :  { %v235_v63 = vpop.permute.xlu0 %234  ;;  %v299_v40 = vadd.f32 %v3445_v56, %v277_v59  ;;  %v384_v59 = vld [vmem:[#allocation2 + $0x58] sm:$0xff] }
 0x16b   :  { %v354_v5 = vmax.f32 %v242_v54, %v334_v58  ;;  %v245_v6 = vadd.f32 %v240_v32, %v235_v63  ;;  %v414_v7 = vsel %vm413_vm2, %v3447_v60, -inf  ;;  %v3465_v32 = vsub.s32 3, %v3426_v28 }
 0x16c   :  { %415 = vmax.xlane.f32.xlu1 %v414_v7  ;;  %v3475_v28 = vadd.f32 %v380_v31, %v360_v21  ;;  %v343_v53 = vmul.f32 0.2, %v299_v40  ;;  %v432_v4 = vsel %vm413_vm2, %v3479_v51, -inf  ;;  %v383_v21 = vld [vmem:[#allocation2 + $0x50] sm:$0xff] }
 0x16d   :  { %v337_v12 = vmul.f32 0.2, %v245_v6  ;;  %v285_v14 = vpop.permute.xlu1 %284  ;;  %v3454_v15 = vadd.f32 %v374_v2, %v354_v5  ;;  %4378 = vst [vmem:[#allocation7_spill] sm:$0xff] %v3465_v32  ;;  %v327_v49 = vrot.slane %v3416_v23, %v3465_v32  ;;  %v381_v23 = vld [vmem:[#allocation2 + $0x40] sm:$0xff]  ;;  %v3490_v5 = vadd.f32 %v384_v59, %v364_v50 }
 0x16e   :  { %v301_v54 = vadd.f32 %v3445_v56, %v285_v14  ;;  %v435_v63 = vsel %vm413_vm2, %v3475_v28, -inf  ;;  %v3495_v17 = vadd.f32 %v381_v23, %v361_v52 }
 0x16f   :  { %v357_v22 = vmax.f32 %v245_v6, %v337_v12  ;;  %v264_v24 = vpop.permute.xlu0 %263  ;;  %v417_v25 = vsel %vm413_vm2, %v3454_v15, -inf  ;;  %v363_v6 = vmax.f32 %v299_v40, %v343_v53  ;;  %v385_v40 = vld [vmem:[#allocation2 + $0x60] sm:$0xff] }
 0x170   :  { %v274_v27 = vadd.f32 %v269_v36, %v264_v24  ;;  %418 = vmax.xlane.f32.xlu0 %v417_v25  ;;  %424 = vmax.xlane.f32.xlu1 %v423_v26  ;;  %v420_v36 = vsel %vm413_vm2, %v3456_v18, -inf  ;;  %v345_v7 = vmul.f32 0.2, %v301_v54  ;;  %v329_v25 = vadd.f32 %v327_v49, %v3436_v35  ;;  %v388_v35 = vld [vmem:[#allocation2 + $0x78] sm:$0xff] }
 0x171   :  { %v289_v38 = vpop.permute.xlu1 %288  ;;  %v3473_v46 = vadd.f32 %v377_v30, %v357_v22  ;;  %v386_v22 = vld [vmem:[#allocation2 + $0x68] sm:$0xff]  ;;  %v447_v26 = vsel %vm413_vm2, %v3490_v5, -inf  ;;  %v3500_v30 = vadd.f32 %v383_v21, %v363_v6  ;;  %v438_v39 = vsel %vm413_vm2, %v3495_v17, -inf }
 0x172   :  { %v342_v41 = vmul.f32 0.2, %v274_v27  ;;  %v302_v42 = vadd.f32 %v3445_v56, %v289_v38 }
 0x173   :  { %v426_v62 = vsel %vm413_vm2, %v3473_v46, -inf }
 0x174   :  { %v362_v47 = vmax.f32 %v274_v27, %v342_v41  ;;  %421 = vmax.xlane.f32.xlu0 %v420_v36  ;;  %430 = vmax.xlane.f32.xlu1 %v429_v44  ;;  %v346_v55 = vmul.f32 0.2, %v302_v42  ;;  %v293_v57 = vpop.permute.xlu0 %292  ;;  %v365_v27 = vmax.f32 %v301_v54, %v345_v7  ;;  %v444_v36 = vsel %vm413_vm2, %v3500_v30, -inf  ;;  %v387_v54 = vld [vmem:[#allocation2 + $0x70] sm:$0xff] }
 0x175   :  { %v303_v9 = vadd.f32 %v3445_v56, %v293_v57 }
 0x176   :  { %v306_v58 = vpop.permute.xlu1 %305  ;;  %v3486_v2 = vadd.f32 %v382_v48, %v362_v47  ;;  %v366_v8 = vmax.f32 %v302_v42, %v346_v55  ;;  %v349_v42 = vmul.f32 0.2, %v329_v25  ;;  %v3510_v47 = vadd.f32 %v385_v40, %v365_v27  ;;  %v390_v55 = vld [vmem:[#allocation2 + $0x88] sm:$0xff] }
 0x177   :  { %v328_v61 = vadd.f32 %v327_v49, %v306_v58  ;;  %v347_v56 = vmul.f32 0.2, %v303_v9 }
 0x178   :  { %427 = vmax.xlane.f32.xlu0 %v426_v62  ;;  %436 = vmax.xlane.f32.xlu1 %v435_v63  ;;  %v441_v14 = vsel %vm413_vm2, %v3486_v2, -inf  ;;  %v3502_v31 = vadd.f32 %v386_v22, %v366_v8  ;;  %v369_v57 = vmax.f32 %v329_v25, %v349_v42  ;;  %v450_v58 = vsel %vm413_vm2, %v3510_v47, -inf }
 0x179   :  { %v348_v11 = vmul.f32 0.2, %v328_v61  ;;  %v322_v24 = vpop.permute.xlu0 %321  ;;  %v367_v43 = vmax.f32 %v303_v9, %v347_v56 }
 0x17a   :  { %v314_v10 = vpop.permute.xlu1 %313  ;;  %v332_v37 = vadd.f32 %v327_v49, %v322_v24  ;;  %v453_v44 = vsel %vm413_vm2, %v3502_v31, -inf }
 0x17b   :  { %v330_v12 = vadd.f32 %v327_v49, %v314_v10  ;;  %v368_v34 = vmax.f32 %v328_v61, %v348_v11  ;;  %v3516_v59 = vadd.f32 %v387_v54, %v367_v43  ;;  %v391_v11 = vld [vmem:[#allocation2 + $0x90] sm:$0xff] }
 0x17c   :  { %433 = vmax.xlane.f32.xlu0 %v432_v4  ;;  %442 = vmax.xlane.f32.xlu1 %v441_v14  ;;  %v352_v48 = vmul.f32 0.2, %v332_v37  ;;  %v392_v4 = vld [vmem:[#allocation2 + $0x98] sm:$0xff] }
 0x17d   :  { %v350_v38 = vmul.f32 0.2, %v330_v12  ;;  %v3512_v53 = vadd.f32 %v388_v35, %v368_v34  ;;  %v456_v8 = vsel %vm413_vm2, %v3516_v59, -inf }
 0x17e   :  { %v318_v41 = vpop.permute.xlu1 %317  ;;  %v372_v61 = vmax.f32 %v332_v37, %v352_v48 }
 0x17f   :  { %v370_v50 = vmax.f32 %v330_v12, %v350_v38  ;;  %v331_v52 = vadd.f32 %v327_v49, %v318_v41  ;;  %v459_v63 = vsel %vm413_vm2, %v3512_v53, -inf  ;;  %v389_v49 = vld [vmem:[#allocation2 + $0x80] sm:$0xff] }
 0x180   :  { %439 = vmax.xlane.f32.xlu0 %v438_v39  ;;  %448 = vmax.xlane.f32.xlu1 %v447_v26  ;;  %v3522_v6 = vadd.f32 %v389_v49, %v369_v57  ;;  %v3528_v10 = vadd.f32 %v392_v4, %v372_v61 }
 0x181   :  { %v351_v62 = vmul.f32 0.2, %v331_v52  ;;  %v3520_v23 = vadd.f32 %v390_v55, %v370_v50 }
 0x182   :  { %v462_v12 = vsel %vm413_vm2, %v3522_v6, -inf  ;;  %v471_v14 = vsel %vm413_vm2, %v3528_v10, -inf }
 0x183   :  { %v371_v7 = vmax.f32 %v331_v52, %v351_v62  ;;  %v465_v9 = vsel %vm413_vm2, %v3520_v23, -inf }
 0x184   :  { %445 = vmax.xlane.f32.xlu0 %v444_v36  ;;  %454 = vmax.xlane.f32.xlu1 %v453_v44 }
 0x185   :  { %v3534_v21 = vadd.f32 %v391_v11, %v371_v7 }
 0x187   :  { %v468_v22 = vsel %vm413_vm2, %v3534_v21, -inf }
 0x188   :  { %451 = vmax.xlane.f32.xlu0 %v450_v58  ;;  %460 = vmax.xlane.f32.xlu1 %v459_v63 }
 0x18c   :  { %457 = vmax.xlane.f32.xlu0 %v456_v8  ;;  %466 = vmax.xlane.f32.xlu1 %v465_v9 }
 0x190   :  { %463 = vmax.xlane.f32.xlu0 %v462_v12  ;;  %472 = vmax.xlane.f32.xlu1 %v471_v14 }
 0x194   :  { %469 = vmax.xlane.f32.xlu0 %v468_v22 }
 0x1f5   :  { %v416_v24 = vpop.xlane.xlu1 %415 }
 0x1f6   :  { %v474_v25 = vsub.f32 %v3447_v60, %v416_v24 }
 0x1f8   :  { %v494_v26 = vmul.f32 1.442695, %v474_v25 }
 0x1f9   :  { %v419_v27 = vpop.xlane.xlu0 %418  ;;  %v425_v56 = vpop.xlane.xlu1 %424 }
 0x1fa   :  { %3069 = vpow2.f32 %v494_v26  ;;  %v475_v34 = vsub.f32 %v3454_v15, %v419_v27  ;;  %v477_v37 = vsub.f32 %v3449_v3, %v425_v56 }
 0x1fc   :  { %v496_v38 = vmul.f32 1.442695, %v475_v34  ;;  %v500_v39 = vmul.f32 1.442695, %v477_v37 }
 0x1fd   :  { %v422_v40 = vpop.xlane.xlu0 %421  ;;  %v431_v41 = vpop.xlane.xlu1 %430 }
 0x1fe   :  { %3071 = vpow2.f32 %v496_v38  ;;  %v476_v35 = vsub.f32 %v3456_v18, %v422_v40  ;;  %v479_v42 = vsub.f32 %v3458_v20, %v431_v41 }
 0x1ff   :  { %3073 = vpow2.f32 %v500_v39 }
 0x200   :  { %v498_v43 = vmul.f32 1.442695, %v476_v35  ;;  %v504_v36 = vmul.f32 1.442695, %v479_v42 }
 0x201   :  { %v428_v60 = vpop.xlane.xlu0 %427  ;;  %v437_v44 = vpop.xlane.xlu1 %436 }
 0x202   :  { %3075 = vpow2.f32 %v498_v43  ;;  %v478_v48 = vsub.f32 %v3473_v46, %v428_v60  ;;  %v481_v3 = vsub.f32 %v3475_v28, %v437_v44 }
 0x203   :  { %3077 = vpow2.f32 %v504_v36 }
 0x204   :  { %v502_v15 = vmul.f32 1.442695, %v478_v48  ;;  %v508_v55 = vmul.f32 1.442695, %v481_v3 }
 0x205   :  { %v434_v50 = vpop.xlane.xlu0 %433  ;;  %v443_v52 = vpop.xlane.xlu1 %442 }
 0x206   :  { %3079 = vpow2.f32 %v502_v15  ;;  %v480_v54 = vsub.f32 %v3479_v51, %v434_v50  ;;  %v483_v20 = vsub.f32 %v3486_v2, %v443_v52 }
 0x207   :  { %v3070_v18 = vpop.eup %3069 }
 0x208   :  { %v506_v57 = vmul.f32 1.442695, %v480_v54  ;;  %2858 = vmatprep.mubr.msk.f32.mxu0 %vm413_vm2, %v3070_v18  ;;  %v534_v58 = vsel %vm413_vm2, %v3070_v18, 0.0  ;;  %v512_v63 = vmul.f32 1.442695, %v483_v20 }
 0x209   :  { %v440_v61 = vpop.xlane.xlu0 %439  ;;  %535 = vadd.xlane.f32.xlu0 %v534_v58  ;;  %v449_v46 = vpop.xlane.xlu1 %448 }
 0x20a   :  { %3081 = vpow2.f32 %v506_v57  ;;  %v482_v28 = vsub.f32 %v3495_v17, %v440_v61  ;;  %v485_v51 = vsub.f32 %v3490_v5, %v449_v46 }
 0x20b   :  { %v3550_v62 = vpop.eup %3071  ;;  %3083 = vpow2.f32 %v508_v55 }
 0x20c   :  { %v510_v49 = vmul.f32 1.442695, %v482_v28  ;;  %2859 = vmatmul.mubr.msk.f32.vlgmr.msra.gmra.mxu0 %vm413_vm2, %v3550_v62  ;;  %v3555_v7 = vpop.eup %3073  ;;  %v516_v11 = vmul.f32 1.442695, %v485_v51  ;;  %v537_v58 = vsel %vm413_vm2, %v3550_v62, 0.0 }
 0x20d   :  { %v446_v2 = vpop.xlane.xlu0 %445  ;;  %v455_v4 = vpop.xlane.xlu1 %454 }
 0x20e   :  { %3085 = vpow2.f32 %v510_v49  ;;  %v484_v8 = vsub.f32 %v3500_v30, %v446_v2  ;;  %v487_v9 = vsub.f32 %v3502_v31, %v455_v4 }
 0x20f   :  { %v3559_v17 = vpop.eup %3075  ;;  %3087 = vpow2.f32 %v512_v63 }
 0x210   :  { %v3078_v12 = vpop.eup %3077  ;;  %v514_v14 = vmul.f32 1.442695, %v484_v8  ;;  %2861 = vmatprep.mubr.msk.f32.mxu0 %vm413_vm2, %v3559_v17  ;;  %v520_v5 = vmul.f32 1.442695, %v487_v9  ;;  %v540_v62 = vsel %vm413_vm2, %v3559_v17, 0.0 }
 0x211   :  { %v452_v22 = vpop.xlane.xlu0 %451  ;;  %2862 = vmatmul.mubr.msk.f32.gmra.mxu0 %vm413_vm2, %v3555_v7  ;;  %v549_v24 = vsel %vm413_vm2, %v3078_v12, 0.0  ;;  %v461_v25 = vpop.xlane.xlu1 %460 }
 0x212   :  { %3089 = vpow2.f32 %v514_v14  ;;  %v486_v30 = vsub.f32 %v3510_v47, %v452_v22  ;;  %550 = vadd.xlane.f32.xlu1 %v549_v24  ;;  %v489_v31 = vsub.f32 %v3512_v53, %v461_v25  ;;  %v1024_v24 = vld [vmem:[#allocation2 + $0xd8] sm:$0xff]  ;;  %v1023_v25 = vld [vmem:[#allocation2 + $0xd0] sm:$0xff] }
 0x213   :  { %v3568_v26 = vpop.eup %3079  ;;  %3091 = vpow2.f32 %v516_v11  ;;  %v543_v11 = vsel %vm413_vm2, %v3555_v7, 0.0  ;;  %2889 = vmatpush3.msra.mxu1 %v1024_v24  ;;  %v1022_v7 = vld [vmem:[#allocation2 + $0xc8] sm:$0xff] }
 0x214   :  { %v518_v27 = vmul.f32 1.442695, %v486_v30  ;;  %v524_v56 = vmul.f32 1.442695, %v489_v31  ;;  %2864 = vmatprep.mubr.msk.f32.mxu0 %vm413_vm2, %v3568_v26  ;;  %3093 = vpow2.f32 %v520_v5  ;;  %v546_v5 = vsel %vm413_vm2, %v3568_v26, 0.0  ;;  %2890 = vmatprep.subr.mxu1 %v4351_v0  ;;  %v1021_v30 = vld [vmem:[#allocation2 + $0xc0] sm:$0xff] }
 0x215   :  { %v458_v34 = vpop.xlane.xlu0 %457  ;;  %2865 = vmatmul.mubr.msk.f32.gmra.mxu0 %vm413_vm2, %v3078_v12  ;;  %v467_v37 = vpop.xlane.xlu1 %466  ;;  %2891 = vmatpush3.msra.mxu1 %v1023_v25 }
 0x216   :  { %3095 = vpow2.f32 %v518_v27  ;;  %v488_v38 = vsub.f32 %v3516_v59, %v458_v34  ;;  %v491_v53 = vsub.f32 %v3520_v23, %v467_v37  ;;  %2892 = vmatprep.subr.mxu1 %v4351_v0 }
 0x217   :  { %v3082_v47 = vpop.eup %3081  ;;  %3097 = vpow2.f32 %v524_v56  ;;  %2893 = vmatpush3.msra.mxu1 %v1022_v7 }
 0x218   :  { %v3084_v39 = vpop.eup %3083  ;;  %v522_v40 = vmul.f32 1.442695, %v488_v38  ;;  %2867 = vmatprep.mubr.msk.f32.mxu0 %vm413_vm2, %v3082_v47  ;;  %v528_v36 = vmul.f32 1.442695, %v491_v53  ;;  %2894 = vmatprep.subr.mxu1 %v4351_v0 }
 0x219   :  { %v464_v41 = vpop.xlane.xlu0 %463  ;;  %2868 = vmatmul.mubr.msk.f32.gmra.mxu0 %vm413_vm2, %v3084_v39  ;;  %v473_v35 = vpop.xlane.xlu1 %472  ;;  %v555_v28 = vsel %vm413_vm2, %v3084_v39, 0.0  ;;  %2895 = vmatpush3.msra.mxu1 %v1021_v30 }
 0x21a   :  { %3099 = vpow2.f32 %v522_v40  ;;  %v490_v42 = vsub.f32 %v3522_v6, %v464_v41  ;;  %v493_v60 = vsub.f32 %v3528_v10, %v473_v35  ;;  %2911 = vmatprep.subr.mxu1 %v4351_v0 }
 0x21b   :  { %v3086_v43 = vpop.eup %3085 }
 0x21c   :  { %v3088_v59 = vpop.eup %3087  ;;  %v526_v44 = vmul.f32 1.442695, %v490_v42  ;;  %2870 = vmatprep.mubr.msk.f32.mxu0 %vm413_vm2, %v3086_v43  ;;  %v532_v15 = vmul.f32 1.442695, %v493_v60  ;;  %v558_v4 = vsel %vm413_vm2, %v3086_v43, 0.0 }
 0x21d   :  { %v470_v23 = vpop.xlane.xlu0 %469  ;;  %2871 = vmatmul.mubr.msk.f32.gmra.mxu0 %vm413_vm2, %v3088_v59  ;;  %v561_v17 = vsel %vm413_vm2, %v3088_v59, 0.0 }
 0x21e   :  { %3101 = vpow2.f32 %v526_v44  ;;  %v492_v48 = vsub.f32 %v3534_v21, %v470_v23  ;;  %v552_v21 = vsel %vm413_vm2, %v3082_v47, 0.0 }
 0x21f   :  { %v3090_v3 = vpop.eup %3089  ;;  %3103 = vpow2.f32 %v528_v36 }
 0x220   :  { %v3092_v50 = vpop.eup %3091  ;;  %v530_v52 = vmul.f32 1.442695, %v492_v48  ;;  %2873 = vmatprep.mubr.msk.f32.mxu0 %vm413_vm2, %v3090_v3  ;;  %v564_v6 = vsel %vm413_vm2, %v3090_v3, 0.0 }
 0x221   :  { %565 = vadd.xlane.f32.xlu0 %v564_v6  ;;  %2874 = vmatmul.mubr.msk.f32.gmra.mxu0 %vm413_vm2, %v3092_v50  ;;  %v3094_v10 = vpop.eup %3093  ;;  %v567_v57 = vsel %vm413_vm2, %v3092_v50, 0.0 }
 0x222   :  { %3105 = vpow2.f32 %v530_v52  ;;  %v573_v9 = vsel %vm413_vm2, %v3094_v10, 0.0 }
 0x223   :  { %v3096_v54 = vpop.eup %3095  ;;  %3107 = vpow2.f32 %v532_v15 }
 0x224   :  { %v3098_v18 = vpop.eup %3097  ;;  %2876 = vmatprep.mubr.msk.f32.mxu0 %vm413_vm2, %v3096_v54  ;;  %v570_v2 = vsel %vm413_vm2, %v3096_v54, 0.0 }
 0x225   :  { %553 = vadd.xlane.f32.xlu0 %v552_v21  ;;  %2877 = vmatmul.mubr.msk.f32.gmra.mxu0 %vm413_vm2, %v3094_v10  ;;  %v579_v55 = vsel %vm413_vm2, %v3098_v18, 0.0 }
 0x226   :  { %580 = vadd.xlane.f32.xlu1 %v579_v55 }
 0x227   :  { %v3100_v20 = vpop.eup %3099 }
 0x228   :  { %2879 = vmatprep.mubr.msk.f32.mxu0 %vm413_vm2, %v3100_v20  ;;  %v576_v14 = vsel %vm413_vm2, %v3100_v20, 0.0 }
 0x229   :  { %568 = vadd.xlane.f32.xlu0 %v567_v57  ;;  %2880 = vmatmul.mubr.msk.f32.gmra.mxu0 %vm413_vm2, %v3098_v18 }
 0x22a   :  { %538 = vadd.xlane.f32.xlu1 %v537_v58 }
 0x22b   :  { %v3102_v61 = vpop.eup %3101 }
 0x22c   :  { %v3104_v46 = vpop.eup %3103  ;;  %2882 = vmatprep.mubr.msk.f32.mxu0 %vm413_vm2, %v3102_v61  ;;  %v582_v63 = vsel %vm413_vm2, %v3102_v61, 0.0 }
 0x22d   :  { %556 = vadd.xlane.f32.xlu0 %v555_v28  ;;  %2883 = vmatmul.mubr.msk.f32.gmra.mxu0 %vm413_vm2, %v3104_v46  ;;  %v585_v8 = vsel %vm413_vm2, %v3104_v46, 0.0 }
 0x22e   :  { %583 = vadd.xlane.f32.xlu1 %v582_v63 }
 0x22f   :  { %v3106_v51 = vpop.eup %3105 }
 0x230   :  { %v3108_v49 = vpop.eup %3107  ;;  %2885 = vmatprep.mubr.msk.f32.mxu0 %vm413_vm2, %v3106_v51  ;;  %v588_v12 = vsel %vm413_vm2, %v3106_v51, 0.0 }
 0x231   :  { %571 = vadd.xlane.f32.xlu0 %v570_v2  ;;  %2886 = vmatmul.mubr.msk.f32.gmra.mxu0 %vm413_vm2, %v3108_v49  ;;  %v591_v22 = vsel %vm413_vm2, %v3108_v49, 0.0 }
 0x232   :  { %541 = vadd.xlane.f32.xlu1 %v540_v62  ;;  %2972 = vmatprep.mubr.msk.f32.mxu0 %vm3335_vm0, %v4351_v0 }
 0x235   :  { %559 = vadd.xlane.f32.xlu0 %v558_v4 }
 0x236   :  { %586 = vadd.xlane.f32.xlu1 %v585_v8 }
 0x239   :  { %574 = vadd.xlane.f32.xlu0 %v573_v9 }
 0x23a   :  { %544 = vadd.xlane.f32.xlu1 %v543_v11 }
 0x23d   :  { %562 = vadd.xlane.f32.xlu0 %v561_v17 }
 0x23e   :  { %589 = vadd.xlane.f32.xlu1 %v588_v12 }
 0x241   :  { %577 = vadd.xlane.f32.xlu0 %v576_v14 }
 0x242   :  { %547 = vadd.xlane.f32.xlu1 %v546_v5 }
 0x246   :  { %592 = vadd.xlane.f32.xlu1 %v591_v22 }
 0x292   :  { %v3620_v31 = vpop.xlane.xlu0 %535 }
 0x293   :  { %v594_v41 = vmax.f32 %v3620_v31, 1e-30 }
 0x295   :  { %3109 = vrcp.f32 %v594_v41 }
 0x29b   :  { %v3624_v27 = vpop.xlane.xlu1 %550 }
 0x29c   :  { %v599_v42 = vmax.f32 %v3624_v27, 1e-30 }
 0x29e   :  { %3111 = vrcp.f32 %v599_v42 }
 0x2a2   :  { %v3110_v51 = vpop.eup %3109 }
 0x2a3   :  { %v634_v24 = vmul.f32 %v3110_v51, %v594_v41 }
 0x2aa   :  { %v3622_v26 = vpop.xlane.xlu0 %565 }
 0x2ab   :  { %v604_v36 = vmax.f32 %v3622_v26, 1e-30  ;;  %v3112_v2 = vpop.eup %3111 }
 0x2ac   :  { %v639_v25 = vmul.f32 %v3112_v2, %v599_v42  ;;  %v654_v42 = vsub.f32 2.0, %v634_v24 }
 0x2ad   :  { %3113 = vrcp.f32 %v604_v36 }
 0x2ae   :  { %v3626_v56 = vpop.xlane.xlu0 %553 }
 0x2af   :  { %v3628_v34 = vpop.xlane.xlu1 %580  ;;  %v600_v59 = vmax.f32 %v3626_v56, 1e-30 }
 0x2b0   :  { %v609_v23 = vmax.f32 %v3628_v34, 1e-30  ;;  %v939_v34 = vld [vmem:[#allocation2 + $0xb8] sm:$0xff] }
 0x2b2   :  { %v3630_v37 = vpop.xlane.xlu0 %568 }
 0x2b3   :  { %v3632_v38 = vpop.xlane.xlu1 %538  ;;  %v605_v3 = vmax.f32 %v3630_v37, 1e-30 }
 0x2b4   :  { %v595_v60 = vmax.f32 %v3632_v38, 1e-30 }
 0x2b6   :  { %v3634_v47 = vpop.xlane.xlu0 %556  ;;  %3115 = vrcp.f32 %v595_v60 }
 0x2b7   :  { %v3636_v53 = vpop.xlane.xlu1 %583  ;;  %v601_v15 = vmax.f32 %v3634_v47, 1e-30  ;;  %3117 = vrcp.f32 %v600_v59 }
 0x2b8   :  { %3119 = vrcp.f32 %v609_v23  ;;  %v610_v6 = vmax.f32 %v3636_v53, 1e-30 }
 0x2b9   :  { %3121 = vrcp.f32 %v605_v3 }
 0x2ba   :  { %v3638_v39 = vpop.xlane.xlu0 %571  ;;  %3123 = vrcp.f32 %v601_v15  ;;  %v3114_v4 = vpop.eup %3113 }
 0x2bb   :  { %v3640_v40 = vpop.xlane.xlu1 %541  ;;  %v606_v54 = vmax.f32 %v3638_v39, 1e-30  ;;  %v644_v26 = vmul.f32 %v3114_v4, %v604_v36 }
 0x2bc   :  { %v596_v50 = vmax.f32 %v3640_v40, 1e-30 }
 0x2bd   :  { %v664_v13 = vsub.f32 2.0, %v644_v26  ;;  %v3731_v26 = vrot.slane %v939_v34, %v3441_v45 }
 0x2be   :  { %v3643_v35 = vpop.xlane.xlu0 %559  ;;  %3125 = vrcp.f32 %v596_v50 }
 0x2bf   :  { %v3646_v43 = vpop.xlane.xlu1 %586  ;;  %v4360_v18 = vmax.f32 %v3643_v35, 1e-30  ;;  %3127 = vrcp.f32 %v610_v6  ;;  %v4379_v45 = vmax.f32 %v3643_v35, 1e-30 }
 0x2c0   :  { %3129 = vrcp.f32 %v606_v54  ;;  %v4358_v57 = vmax.f32 %v3646_v43, 1e-30 }
 0x2c1   :  { %3131 = vrcp.f32 %v4360_v18 }
 0x2c2   :  { %v3651_v44 = vpop.xlane.xlu0 %574 }
 0x2c3   :  { %v3654_v48 = vpop.xlane.xlu1 %544  ;;  %v4355_v49 = vmax.f32 %v3651_v44, 1e-30  ;;  %v3116_v9 = vpop.eup %3115 }
 0x2c4   :  { %v4357_v46 = vmax.f32 %v3654_v48, 1e-30  ;;  %v3118_v17 = vpop.eup %3117  ;;  %v635_v7 = vmul.f32 %v3116_v9, %v595_v60  ;;  %v659_v60 = vsub.f32 2.0, %v639_v25  ;;  %v3728_v25 = vrot.slane %v939_v34, %v3434_v33 }
 0x2c5   :  { %v3120_v5 = vpop.eup %3119  ;;  %v640_v56 = vmul.f32 %v3118_v17, %v600_v59 }
 0x2c6   :  { %v3659_v52 = vpop.xlane.xlu0 %562  ;;  %v3122_v22 = vpop.eup %3121  ;;  %v655_v1 = vsub.f32 2.0, %v635_v7 }
 0x2c7   :  { %v3662_v10 = vpop.xlane.xlu1 %589  ;;  %v4359_v21 = vmax.f32 %v3659_v52, 1e-30  ;;  %v3124_v31 = vpop.eup %3123  ;;  %v645_v19 = vmul.f32 %v3122_v22, %v605_v3  ;;  %v660_v3 = vsub.f32 2.0, %v640_v56 }
 0x2c8   :  { %v4354_v11 = vmax.f32 %v3662_v10, 1e-30  ;;  %v641_v59 = vmul.f32 %v3124_v31, %v601_v15  ;;  %v675_v53 = vmul.f32 %v3116_v9, %v655_v1 }
 0x2c9   :  { %v680_v1 = vmul.f32 %v3118_v17, %v660_v3 }
 0x2ca   :  { %v3673_v55 = vpop.xlane.xlu0 %577 }
 0x2cb   :  { %v3675_v20 = vpop.xlane.xlu1 %547  ;;  %v4356_v28 = vmax.f32 %v3673_v55, 1e-30  ;;  %v3126_v27 = vpop.eup %3125 }
 0x2cc   :  { %v598_v58 = vmax.f32 %v3675_v20, 1e-30  ;;  %v3681_v61 = vpop.f32.mrf.mxu0  ;;  %v3128_v38 = vpop.eup %3127  ;;  %v649_v20 = vmul.f32 %v3120_v5, %v609_v23  ;;  %v636_v0 = vmul.f32 %v3126_v27, %v596_v50  ;;  %v3736_v50 = vrot.slane %v939_v34, %v3465_v32 }
 0x2cd   :  { %v3130_v41 = vpop.eup %3129  ;;  %v650_v24 = vmul.f32 %v3128_v38, %v610_v6  ;;  %v674_v6 = vmul.f32 %v3110_v51, %v654_v42  ;;  %v4381_v42 = vmax.f32 %v3646_v43, 1e-30  ;;  %v4384_v43 = vmax.f32 %v3651_v44, 1e-30 }
 0x2ce   :  { %3133 = vrcp.f32 %v598_v58  ;;  %v3687_v63 = vpop.f32.mrf.mxu0  ;;  %v3716_v36 = vpop.eup %3131  ;;  %v669_v15 = vsub.f32 2.0, %v649_v20  ;;  %v646_v40 = vmul.f32 %v3130_v41, %v606_v54  ;;  %v656_v18 = vsub.f32 2.0, %v636_v0 }
 0x2cf   :  { %3135 = vrcp.f32 %v4359_v21  ;;  %v3694_v62 = vpop.xlane.xlu1 %592  ;;  %v661_v21 = vsub.f32 2.0, %v641_v59  ;;  %v684_v20 = vmul.f32 %v3114_v4, %v664_v13  ;;  %v670_v54 = vsub.f32 2.0, %v650_v24 }
 0x2d0   :  { %3137 = vrcp.f32 %v4358_v57  ;;  %v4353_v12 = vmax.f32 %v3694_v62, 1e-30  ;;  %v666_v9 = vsub.f32 2.0, %v646_v40  ;;  %v689_v35 = vmul.f32 %v3120_v5, %v669_v15 }
 0x2d1   :  { %3139 = vrcp.f32 %v4357_v46  ;;  %v3698_v8 = vpop.f32.mrf.mxu0  ;;  %v919_v59 = vmul.f32 %v3687_v63, %v674_v6  ;;  %v676_v3 = vmul.f32 %v3126_v27, %v656_v18 }
 0x2d2   :  { %3141 = vrcp.f32 %v4356_v28  ;;  %v679_v28 = vmul.f32 %v3112_v2, %v659_v60  ;;  %v686_v6 = vmul.f32 %v3130_v41, %v666_v9  ;;  %v4386_v41 = vmax.f32 %v3694_v62, 1e-30 }
 0x2d3   :  { %3143 = vrcp.f32 %v4355_v49  ;;  %v3706_v14 = vpop.f32.mrf.mxu0 }
 0x2d4   :  { %3145 = vrcp.f32 %v4354_v11  ;;  %v665_v11 = vsub.f32 2.0, %v645_v19  ;;  %v642_v19 = vmul.f32 %v3716_v36, %v4379_v45  ;;  %v4382_v45 = vmax.f32 %v3654_v48, 1e-30 }
 0x2d5   :  { %v2866_v30 = vpop.f32.mrf.mxu0  ;;  %3147 = vrcp.f32 %v4353_v12  ;;  %v3723_v12 = vrot.slane %v939_v34, %v3429_v29  ;;  %v4380_v34 = vmax.f32 %v3659_v52, 1e-30 }
 0x2d6   :  { %v685_v60 = vmul.f32 %v3122_v22, %v665_v11  ;;  %v924_v52 = vmul.f32 %v2866_v30, %v679_v28  ;;  %v921_v28 = vmul.f32 %v3706_v14, %v676_v3 }
 0x2d7   :  { %v3712_v37 = vpop.f32.mrf.mxu0  ;;  %v944_v18 = vmul.f32 %v3723_v12, %v919_v59 }
 0x2d9   :  { %v3714_v16 = vpop.f32.mrf.mxu0 }
 0x2db   :  { %v3134_v23 = vpop.eup %3133  ;;  %v850_v7 = vpop.f32.mrf.mxu0 }
 0x2dc   :  { %v3136_v47 = vpop.eup %3135  ;;  %v638_v49 = vmul.f32 %v3134_v23, %v598_v58  ;;  %v920_v58 = vmul.f32 %v3681_v61, %v675_v53  ;;  %v4383_v61 = vmax.f32 %v3673_v55, 1e-30  ;;  %v681_v53 = vmul.f32 %v3124_v31, %v661_v21 }
 0x2dd   :  { %v3138_v56 = vpop.eup %3137  ;;  %v3738_v46 = vpop.f32.mrf.mxu0  ;;  %v643_v32 = vmul.f32 %v3136_v47, %v4380_v34  ;;  %v662_v34 = vsub.f32 2.0, %v642_v19  ;;  %v953_v21 = vmul.f32 %v3728_v25, %v924_v52  ;;  %v925_v19 = vmul.f32 %v850_v7, %v680_v1 }
 0x2de   :  { %v3140_v57 = vpop.eup %3139  ;;  %v651_v0 = vmul.f32 %v3138_v56, %v4381_v42  ;;  %v658_v4 = vsub.f32 2.0, %v638_v49  ;;  %v945_v48 = vmul.f32 %v3723_v12, %v920_v58  ;;  %v690_v49 = vmul.f32 %v3128_v38, %v670_v54 }
 0x2df   :  { %v3142_v39 = vpop.eup %3141  ;;  %v3746_v51 = vpop.f32.mrf.mxu0  ;;  %v637_v13 = vmul.f32 %v3140_v57, %v4382_v45  ;;  %v663_v5 = vsub.f32 2.0, %v643_v32  ;;  %v926_v32 = vmul.f32 %v3714_v16, %v681_v53  ;;  %v682_v58 = vmul.f32 %v3716_v36, %v662_v34 }
 0x2e0   :  { %v3144_v2 = vpop.eup %3143  ;;  %v648_v17 = vmul.f32 %v3142_v39, %v4383_v61  ;;  %v671_v63 = vsub.f32 2.0, %v651_v0  ;;  %v678_v31 = vmul.f32 %v3134_v23, %v658_v4  ;;  %v4385_v54 = vmax.f32 %v3662_v10, 1e-30 }
 0x2e1   :  { %v2875_v24 = vpop.f32.mrf.mxu0  ;;  %v3755_v40 = vpop.eup %3145  ;;  %v647_v11 = vmul.f32 %v3144_v2, %v4384_v43  ;;  %v657_v55 = vsub.f32 2.0, %v637_v13  ;;  %v683_v9 = vmul.f32 %v3136_v47, %v663_v5  ;;  %v946_v0 = vmul.f32 %v3723_v12, %v921_v28 }
 0x2e2   :  { %v3148_v15 = vpop.eup %3147  ;;  %v668_v44 = vsub.f32 2.0, %v648_v17  ;;  %v652_v14 = vmul.f32 %v3755_v40, %v4385_v54  ;;  %v691_v13 = vmul.f32 %v3138_v56, %v671_v63  ;;  %v958_v7 = vadd.f32 %v953_v21, %v944_v18 }
 0x2e3   :  { %v870_v22 = vpop.f32.mrf.mxu0  ;;  %v667_v38 = vsub.f32 2.0, %v647_v11  ;;  %v677_v16 = vmul.f32 %v3140_v57, %v657_v55  ;;  %v923_v36 = vmul.f32 %v3712_v37, %v678_v31  ;;  %v930_v1 = vmul.f32 %v2875_v24, %v685_v60 }
 0x2e4   :  { %v929_v30 = vmul.f32 %v870_v22, %v684_v20  ;;  %v653_v20 = vmul.f32 %v3148_v15, %v4386_v41  ;;  %v955_v10 = vmul.f32 %v3728_v25, %v926_v32  ;;  %v954_v59 = vmul.f32 %v3728_v25, %v925_v19 }
 0x2e5   :  { %v2878_v27 = vpop.f32.mrf.mxu0  ;;  %v688_v52 = vmul.f32 %v3142_v39, %v668_v44  ;;  %v672_v47 = vsub.f32 2.0, %v652_v14  ;;  %v928_v61 = vmul.f32 %v3738_v46, %v683_v9  ;;  %v687_v17 = vmul.f32 %v3144_v2, %v667_v38 }
 0x2e6   :  { %v967_v23 = vmul.f32 %v3731_v26, %v929_v30  ;;  %v673_v34 = vsub.f32 2.0, %v653_v20  ;;  %v922_v60 = vmul.f32 %v3698_v8, %v677_v16  ;;  %v948_v24 = vmul.f32 %v3723_v12, %v923_v36 }
 0x2e7   :  { %v880_v42 = vpop.f32.mrf.mxu0  ;;  %v927_v43 = vmul.f32 %v3746_v51, %v682_v58  ;;  %v968_v39 = vmul.f32 %v3731_v26, %v930_v1  ;;  %v960_v11 = vadd.f32 %v955_v10, %v946_v0  ;;  %v959_v5 = vadd.f32 %v954_v59, %v945_v48 }
 0x2e8   :  { %v931_v45 = vmul.f32 %v880_v42, %v686_v6  ;;  %v972_v53 = vadd.f32 %v967_v23, %v958_v7  ;;  %v957_v22 = vmul.f32 %v3728_v25, %v928_v61  ;;  %v932_v63 = vmul.f32 %v2878_v27, %v687_v17 }
 0x2e9   :  { %v2881_v4 = vpop.f32.mrf.mxu0  ;;  %v693_v6 = vmul.f32 %v3148_v15, %v673_v34  ;;  %v956_v31 = vmul.f32 %v3728_v25, %v927_v43  ;;  %v973_v44 = vadd.f32 %v968_v39, %v959_v5  ;;  %v947_v27 = vmul.f32 %v3723_v12, %v922_v60 }
 0x2ea   :  { %v934_v62 = vmul.f32 %v2881_v4, %v689_v35  ;;  %v969_v57 = vmul.f32 %v3731_v26, %v931_v45  ;;  %v962_v51 = vadd.f32 %v957_v22, %v948_v24  ;;  %v970_v54 = vmul.f32 %v3731_v26, %v932_v63  ;;  %v1131_v24 = vld [vmem:[#allocation2 + $0xe0] sm:$0xff] }
 0x2eb   :  { %v890_v3 = vpop.f32.mrf.mxu0  ;;  %v692_v14 = vmul.f32 %v3755_v40, %v672_v47  ;;  %v961_v9 = vadd.f32 %v956_v31, %v947_v27  ;;  %v4390_v22 = vmov 33   ;;  %v3289_v27 = vld [vmem:[#allocation2] sm:$0xff] }
 0x2ec   :  { %v981_v56 = vmul.f32 %v3736_v50, %v934_v62  ;;  %v933_v37 = vmul.f32 %v890_v3, %v688_v52  ;;  %v974_v55 = vadd.f32 %v969_v57, %v960_v11  ;;  %v4387_v52 = vmov 0.0  }
 0x2ed   :  { %v2884_v35 = vpop.f32.mrf.mxu0  ;;  %v4389_v11 = vmov 34  }
 0x2ee   :  { %v986_v46 = vadd.f32 %v981_v56, %v972_v53  ;;  %v936_v2 = vmul.f32 %v2884_v35, %v691_v13  ;;  %v971_v28 = vmul.f32 %v3731_v26, %v933_v37  ;;  %v975_v13 = vadd.f32 %v970_v54, %v961_v9 }
 0x2ef   :  { %v900_v30 = vpop.f32.mrf.mxu0  ;;  %v4388_v35 = vmov 32  }
 0x2f0   :  { %v996_v8 = vmin.f32 %v986_v46, 0.0  ;;  %v983_v18 = vmul.f32 %v3736_v50, %v936_v2  ;;  %v935_v21 = vmul.f32 %v900_v30, %v690_v49  ;;  %v976_v15 = vadd.f32 %v971_v28, %v962_v51 }
 0x2f1   :  { %v2887_v32 = vpop.f32.mrf.mxu0  ;;  %vm991_vm4 = vcmp.gt.f32.partialorder %v986_v46, 0.0  ;;  %v4391_v30 = vmov 35  }
 0x2f2   :  { %v1001_v48 = vmul.f32 1.442695, %v996_v8  ;;  %v988_v19 = vadd.f32 %v983_v18, %v974_v55  ;;  %v982_v58 = vmul.f32 %v3736_v50, %v935_v21  ;;  %v938_v38 = vmul.f32 %v2887_v32, %v693_v6 }
 0x2f3   :  { %v910_v41 = vpop.f32.mrf.mxu0 }
 0x2f4   :  { %3149 = vpow2.f32 %v1001_v48  ;;  %v998_v49 = vmin.f32 %v988_v19, 0.0  ;;  %v987_v20 = vadd.f32 %v982_v58, %v973_v44  ;;  %v985_v25 = vmul.f32 %v3736_v50, %v938_v38 }
 0x2f5   :  { %v937_v42 = vmul.f32 %v910_v41, %v692_v14  ;;  %vm993_vm7 = vcmp.gt.f32.partialorder %v988_v19, 0.0 }
 0x2f6   :  { %v1005_v0 = vmul.f32 1.442695, %v998_v49  ;;  %v997_v23 = vmin.f32 %v987_v20, 0.0  ;;  %v990_v45 = vadd.f32 %v985_v25, %v976_v15  ;;  %vm992_vm5 = vcmp.gt.f32.partialorder %v987_v20, 0.0 }
 0x2f7   :  { %v984_v16 = vmul.f32 %v3736_v50, %v937_v42 }
 0x2f8   :  { %v1003_v12 = vmul.f32 1.442695, %v997_v23  ;;  %v1000_v7 = vmin.f32 %v990_v45, 0.0  ;;  %3151 = vpow2.f32 %v1005_v0  ;;  %vm995_vm6 = vcmp.gt.f32.partialorder %v990_v45, 0.0 }
 0x2f9   :  { %v989_v26 = vadd.f32 %v984_v16, %v975_v13 }
 0x2fa   :  { %3153 = vpow2.f32 %v1003_v12  ;;  %v1009_v40 = vmul.f32 1.442695, %v1000_v7 }
 0x2fb   :  { %v999_v36 = vmin.f32 %v989_v26, 0.0  ;;  %vm994_vm8 = vcmp.gt.f32.partialorder %v989_v26, 0.0 }
 0x2fc   :  { %3155 = vpow2.f32 %v1009_v40  ;;  %v3291_v40 = vld [vmem:[#allocation2 + $0x10] sm:$0xff] }
 0x2fd   :  { %v1007_v1 = vmul.f32 1.442695, %v999_v36 }
 0x2ff   :  { %3157 = vpow2.f32 %v1007_v1 }
 0x301   :  { %v3150_v4 = vpop.eup %3149 }
 0x302   :  { %v2646_v10 = vadd.f32 -1.0, %v3150_v4 }
 0x304   :  { %v1016_v59 = vsel %vm991_vm4, %v986_v46, %v2646_v10 }
 0x305   :  { %2897 = vmatmul.mubr.msk.f32.vlgmr.msra.gmra.mxu1 %vm1025_vm3, %v1016_v59  ;;  %v3152_v62 = vpop.eup %3151 }
 0x306   :  { %2899 = vmatprep.mubr.msk.f32.mxu1 %vm3335_vm0, %v4387_v52  ;;  %v2648_v3 = vadd.f32 -1.0, %v3152_v62 }
 0x307   :  { %v3154_v50 = vpop.eup %3153 }
 0x308   :  { %v2647_v47 = vadd.f32 -1.0, %v3154_v50  ;;  %v1018_v37 = vsel %vm993_vm7, %v988_v19, %v2648_v3 }
 0x309   :  { %v3156_v34 = vpop.eup %3155 }
 0x30a   :  { %v1017_v61 = vsel %vm992_vm5, %v987_v20, %v2647_v47  ;;  %v2650_v17 = vadd.f32 -1.0, %v3156_v34  ;;  %v3290_v20 = vld [vmem:[#allocation2 + $0x8] sm:$0xff] }
 0x30b   :  { %2900 = vmatmul.mubr.msk.f32.gmra.mxu1 %vm1025_vm3, %v1017_v61 }
 0x30c   :  { %v3158_v53 = vpop.eup %3157  ;;  %v1020_v57 = vsel %vm995_vm6, %v990_v45, %v2650_v17  ;;  %2902 = vmatprep.mubr.msk.f32.mxu1 %vm3335_vm0, %v4387_v52 }
 0x30d   :  { %2912 = vmatpush3.xpose.msk.msra.mxu1 %vm1025_vm3, %v1020_v57  ;;  %v2649_v56 = vadd.f32 -1.0, %v3158_v53 }
 0x30e   :  { %2913 = vmatprep.subr.mxu1 %v4387_v52 }
 0x30f   :  { %2903 = vmatmul.mubr.msk.f32.gmra.mxu1 %vm1025_vm3, %v1018_v37  ;;  %v1019_v60 = vsel %vm994_vm8, %v989_v26, %v2649_v56 }
 0x310   :  { %2905 = vmatprep.mubr.msk.f32.mxu1 %vm3335_vm0, %v4387_v52 }
 0x311   :  { %2914 = vmatpush3.xpose.msk.msra.mxu1 %vm1025_vm3, %v1019_v60 }
 0x312   :  { %2915 = vmatprep.subr.mxu1 %v4387_v52 }
 0x313   :  { %2906 = vmatmul.mubr.msk.f32.gmra.mxu1 %vm1025_vm3, %v1019_v60 }
 0x314   :  { %2908 = vmatprep.mubr.msk.f32.mxu1 %vm3335_vm0, %v4387_v52 }
 0x315   :  { %2916 = vmatpush3.xpose.msk.msra.mxu1 %vm1025_vm3, %v1018_v37 }
 0x316   :  { %2917 = vmatprep.subr.mxu1 %v4387_v52 }
 0x317   :  { %2909 = vmatmul.mubr.msk.f32.gmra.mxu1 %vm1025_vm3, %v1020_v57 }
 0x318   :  { %2921 = vmatprep.mubr.msk.f32.mxu1 %vm3335_vm0, %v4387_v52 }
 0x319   :  { %2918 = vmatpush3.xpose.msk.msra.mxu1 %vm1025_vm3, %v1017_v61 }
 0x31a   :  { %2919 = vmatprep.subr.mxu1 %v4387_v52 }
 0x31d   :  { %2920 = vmatpush3.xpose.msk.msra.mxu1 %vm1025_vm3, %v1016_v59 }
 0x320   :  { %2922 = vmatmul.mubr.msk.f32.vlgmr.msra.gmra.mxu1 %vm1025_vm3, %v1131_v24  ;;  %v3292_v24 = vld [vmem:[#allocation2 + $0x18] sm:$0xff] }
 0x3c5   :  { %v1107_v43 = vpop.f32.mrf.mxu1 }
 0x3c6   :  { %1240 = vperm.xlu1 %3050, %v1107_v43   ;;  %1207 = vperm.xlu0 %3049, %v1107_v43  }
 0x3c7   :  { %v2898_v39 = vpop.f32.mrf.mxu1 }
 0x3c8   :  { %v4392_v39 = vld [vmem:[#allocation6_spill] sm:$0xff] }
 0x3ca   :  { %3051 = vset.pattern.permute.xlu1 %v4388_v35  ;;  %3058 = vset.pattern.permute.xlu0 %v4389_v11 }
 0x3cb   :  { %v1112_v5 = vpop.f32.mrf.mxu1 }
 0x3cc   :  { %1212 = vperm.xlu1 %3051, %v1112_v5  }
 0x3cd   :  { %v2901_v46 = vpop.f32.mrf.mxu1 }
 0x3cf   :  { %v1117_v2 = vpop.f32.mrf.mxu1 }
 0x3d0   :  { %3052 = vset.pattern.permute.xlu1 %v4390_v22  ;;  %1277 = vperm.xlu0 %3058, %v1117_v2  }
 0x3d1   :  { %1244 = vperm.xlu1 %3052, %v1112_v5   ;;  %v2904_v63 = vpop.f32.mrf.mxu1 }
 0x3d3   :  { %v1122_v28 = vpop.f32.mrf.mxu1 }
 0x3d4   :  { %3059 = vset.pattern.permute.xlu0 %v4391_v30 }
 0x3d5   :  { %3053 = vset.pattern.permute.xlu1 %v4388_v35  ;;  %1298 = vperm.xlu0 %3059, %v1107_v43   ;;  %v2907_v6 = vpop.f32.mrf.mxu1 }
 0x3d6   :  { %1217 = vperm.xlu1 %3053, %v1117_v2  }
 0x3d7   :  { %v1127_v55 = vpop.f32.mrf.mxu1 }
 0x3d8   :  { %2924 = vmatprep.subr.mxu1 %v1127_v55 }
 0x3d9   :  { %3060 = vset.pattern.permute.xlu0 %v4390_v22  ;;  %v2910_v8 = vpop.f32.mrf.mxu1  ;;  %2925 = vmatpush3.msra.mxu1 %v1127_v55 }
 0x3da   :  { %3054 = vset.pattern.permute.xlu1 %v4390_v22  ;;  %1256 = vperm.xlu0 %3060, %v1127_v55  }
 0x3db   :  { %2926 = vmatprep.subr.mxu1 %v1122_v28  ;;  %1248 = vperm.xlu1 %3054, %v1117_v2  }
 0x3dc   :  { %2927 = vmatpush3.msra.mxu1 %v1122_v28 }
 0x3dd   :  { %2928 = vmatprep.subr.mxu1 %v1117_v2 }
 0x3de   :  { %2929 = vmatpush3.msra.mxu1 %v1117_v2  ;;  %3062 = vset.pattern.permute.xlu0 %v4391_v30 }
 0x3df   :  { %2930 = vmatprep.subr.mxu1 %v1112_v5  ;;  %3055 = vset.pattern.permute.xlu1 %v4388_v35 }
 0x3e0   :  { %1310 = vperm.xlu0 %3062, %v1122_v28   ;;  %2931 = vmatpush3.msra.mxu1 %v1112_v5  ;;  %v3826_v18 = vpop.f32.mrf.mxu1 }
 0x3e1   :  { %1222 = vperm.xlu1 %3055, %v1122_v28   ;;  %2932 = vmatprep.subr.mxu1 %v1107_v43  ;;  %v1233_v51 = vrot.slane %v3826_v18, %v3429_v29  ;;  %v1262_v45 = vrot.slane %v3826_v18, %v3434_v33  ;;  %v3851_v35 = vrot.slane %v3826_v18, %v4392_v39 }
 0x3e2   :  { %2933 = vmatpush3.msra.mxu1 %v1107_v43  ;;  %v2923_v21 = vpop.f32.mrf.mxu1 }
 0x3e5   :  { %1227 = vperm.xlu1 %3055, %v1127_v55  }
 0x3e9   :  { %3056 = vset.pattern.permute.xlu1 %v4390_v22 }
 0x3ea   :  { %1252 = vperm.xlu1 %3056, %v1122_v28  }
 0x3ee   :  { %3057 = vset.pattern.permute.xlu1 %v4389_v11 }
 0x3ef   :  { %1269 = vperm.xlu1 %3057, %v1107_v43  }
 0x3f3   :  { %1273 = vperm.xlu1 %3057, %v1112_v5  }
 0x3f7   :  { %1281 = vperm.xlu1 %3057, %v1122_v28  }
 0x3fb   :  { %1285 = vperm.xlu1 %3057, %v1127_v55  }
 0x3ff   :  { %3061 = vset.pattern.permute.xlu1 %v4391_v30 }
 0x400   :  { %1302 = vperm.xlu1 %3061, %v1112_v5   ;;  %v3293_v5 = vld [vmem:[#allocation2 + $0x28] sm:$0xff] }
 0x404   :  { %1306 = vperm.xlu1 %3061, %v1117_v2  }
 0x408   :  { %1314 = vperm.xlu1 %3061, %v1127_v55   ;;  %v3294_v55 = vld [vmem:[#allocation2 + $0x20] sm:$0xff] }
 0x441   :  { %v1208_v31 = vpop.permute.xlu0 %1207  ;;  %v1241_v32 = vpop.permute.xlu1 %1240 }
 0x442   :  { %v1234_v44 = vadd.f32 %v1233_v51, %v1208_v31  ;;  %v1263_v7 = vadd.f32 %v1262_v45, %v1241_v32  ;;  %v3295_v31 = vld [vmem:[#allocation2 + $0x30] sm:$0xff] }
 0x444   :  { %v1326_v48 = vmul.f32 0.2, %v1234_v44  ;;  %v1331_v4 = vmul.f32 0.2, %v1263_v7 }
 0x446   :  { %v1346_v19 = vmax.f32 %v1234_v44, %v1326_v48  ;;  %v1351_v61 = vmax.f32 %v1263_v7, %v1331_v4 }
 0x447   :  { %v1213_v58 = vpop.permute.xlu1 %1212 }
 0x448   :  { %v1235_v38 = vadd.f32 %v1233_v51, %v1213_v58  ;;  %v3833_v54 = vadd.f32 %v3289_v27, %v1346_v19  ;;  %v3853_v46 = vadd.f32 %v3293_v5, %v1351_v61  ;;  %v3296_v58 = vld [vmem:[#allocation2 + $0x38] sm:$0xff] }
 0x44a   :  { %v1327_v15 = vmul.f32 0.2, %v1235_v38  ;;  %v1386_v14 = vsel %vm413_vm2, %v3833_v54, -inf  ;;  %v1401_v19 = vsel %vm413_vm2, %v3853_v46, -inf }
 0x44b   :  { %1387 = vmax.xlane.f32.xlu0 %v1386_v14  ;;  %v1278_v0 = vpop.permute.xlu0 %1277  ;;  %v4393_v14 = vld [vmem:[#allocation7_spill] sm:$0xff] }
 0x44c   :  { %v1347_v41 = vmax.f32 %v1235_v38, %v1327_v15  ;;  %v1245_v49 = vpop.permute.xlu1 %1244  ;;  %v1294_v21 = vadd.f32 %v3851_v35, %v1278_v0 }
 0x44d   :  { %v1264_v10 = vadd.f32 %v1262_v45, %v1245_v49 }
 0x44e   :  { %v3837_v25 = vadd.f32 %v3290_v20, %v1347_v41  ;;  %v3870_v41 = vrot.slane %v3826_v18, %v4393_v14  ;;  %v1338_v20 = vmul.f32 0.2, %v1294_v21 }
 0x44f   :  { %v1332_v17 = vmul.f32 0.2, %v1264_v10 }
 0x450   :  { %v1389_v9 = vsel %vm413_vm2, %v3837_v25, -inf  ;;  %v1299_v26 = vpop.permute.xlu0 %1298 }
 0x451   :  { %v1218_v42 = vpop.permute.xlu1 %1217  ;;  %1390 = vmax.xlane.f32.xlu1 %v1389_v9  ;;  %v1352_v11 = vmax.f32 %v1264_v10, %v1332_v17  ;;  %v1321_v18 = vadd.f32 %v3870_v41, %v1299_v26 }
 0x452   :  { %v1236_v23 = vadd.f32 %v1233_v51, %v1218_v42 }
 0x453   :  { %v3860_v44 = vadd.f32 %v3295_v31, %v1352_v11 }
 0x454   :  { %v1328_v13 = vmul.f32 0.2, %v1236_v23 }
 0x455   :  { %v1257_v47 = vpop.permute.xlu0 %1256  ;;  %v1404_v9 = vsel %vm413_vm2, %v3860_v44, -inf }
 0x456   :  { %v1348_v16 = vmax.f32 %v1236_v23, %v1328_v13  ;;  %v1249_v12 = vpop.permute.xlu1 %1248  ;;  %v1267_v53 = vadd.f32 %v1262_v45, %v1257_v47  ;;  %v3297_v23 = vld [vmem:[#allocation2 + $0x40] sm:$0xff]  ;;  %v3298_v13 = vld [vmem:[#allocation2 + $0x48] sm:$0xff] }
 0x457   :  { %v1265_v62 = vadd.f32 %v1262_v45, %v1249_v12 }
 0x458   :  { %v3843_v36 = vadd.f32 %v3291_v40, %v1348_v16  ;;  %v1335_v2 = vmul.f32 0.2, %v1267_v53 }
 0x459   :  { %v1333_v57 = vmul.f32 0.2, %v1265_v62 }
 0x45a   :  { %v1392_v1 = vsel %vm413_vm2, %v3843_v36, -inf  ;;  %v1355_v32 = vmax.f32 %v1267_v53, %v1335_v2 }
 0x45b   :  { %1393 = vmax.xlane.f32.xlu0 %v1392_v1  ;;  %v1353_v22 = vmax.f32 %v1265_v62, %v1333_v57  ;;  %v1358_v1 = vmax.f32 %v1294_v21, %v1338_v20  ;;  %v3299_v62 = vld [vmem:[#allocation2 + $0x50] sm:$0xff]  ;;  %v1311_v17 = vpop.permute.xlu0 %1310  ;;  %v3300_v57 = vld [vmem:[#allocation2 + $0x58] sm:$0xff] }
 0x45c   :  { %v1223_v59 = vpop.permute.xlu1 %1222  ;;  %v3879_v16 = vadd.f32 %v3298_v13, %v1355_v32 }
 0x45d   :  { %v1237_v50 = vadd.f32 %v1233_v51, %v1223_v59  ;;  %v3866_v38 = vadd.f32 %v3296_v58, %v1353_v22  ;;  %v3304_v58 = vld [vmem:[#allocation2 + $0x70] sm:$0xff] }
 0x45e   :  { %v1413_v59 = vsel %vm413_vm2, %v3879_v16, -inf }
 0x45f   :  { %v1329_v34 = vmul.f32 0.2, %v1237_v50  ;;  %v1407_v0 = vsel %vm413_vm2, %v3866_v38, -inf }
 0x460   :  { %v1228_v3 = vpop.permute.xlu1 %1227 }
 0x461   :  { %v1349_v56 = vmax.f32 %v1237_v50, %v1329_v34  ;;  %v1238_v37 = vadd.f32 %v1233_v51, %v1228_v3  ;;  %v1341_v34 = vmul.f32 0.2, %v1321_v18 }
 0x463   :  { %v1330_v60 = vmul.f32 0.2, %v1238_v37  ;;  %v3847_v43 = vadd.f32 %v3292_v24, %v1349_v56  ;;  %v1361_v11 = vmax.f32 %v1321_v18, %v1341_v34 }
 0x465   :  { %v1350_v63 = vmax.f32 %v1238_v37, %v1330_v60  ;;  %v1253_v28 = vpop.permute.xlu1 %1252  ;;  %v1395_v30 = vsel %vm413_vm2, %v3847_v43, -inf  ;;  %v3301_v37 = vld [vmem:[#allocation2 + $0x60] sm:$0xff] }
 0x466   :  { %v1266_v6 = vadd.f32 %v1262_v45, %v1253_v28  ;;  %1396 = vmax.xlane.f32.xlu0 %v1395_v30  ;;  %v3894_v60 = vadd.f32 %v3301_v37, %v1358_v1 }
 0x467   :  { %v3857_v8 = vadd.f32 %v3294_v55, %v1350_v63  ;;  %v1324_v63 = vadd.f32 %v3870_v41, %v1311_v17 }
 0x468   :  { %v1334_v51 = vmul.f32 0.2, %v1266_v6  ;;  %v1422_v30 = vsel %vm413_vm2, %v3894_v60, -inf }
 0x469   :  { %v1398_v48 = vsel %vm413_vm2, %v3857_v8, -inf }
 0x46a   :  { %v1354_v27 = vmax.f32 %v1266_v6, %v1334_v51  ;;  %v1270_v15 = vpop.permute.xlu1 %1269  ;;  %1399 = vmax.xlane.f32.xlu1 %v1398_v48  ;;  %1402 = vmax.xlane.f32.xlu0 %v1401_v19  ;;  %v3302_v6 = vld [vmem:[#allocation2 + $0x68] sm:$0xff]  ;;  %v1344_v48 = vmul.f32 0.2, %v1324_v63 }
 0x46b   :  { %v1292_v49 = vadd.f32 %v3851_v35, %v1270_v15 }
 0x46c   :  { %v3877_v45 = vadd.f32 %v3297_v23, %v1354_v27 }
 0x46d   :  { %v1336_v42 = vmul.f32 0.2, %v1292_v49 }
 0x46e   :  { %v1274_v12 = vpop.permute.xlu1 %1273  ;;  %1405 = vmax.xlane.f32.xlu1 %v1404_v9  ;;  %1408 = vmax.xlane.f32.xlu0 %v1407_v0  ;;  %v1410_v10 = vsel %vm413_vm2, %v3877_v45, -inf }
 0x46f   :  { %v1356_v7 = vmax.f32 %v1292_v49, %v1336_v42  ;;  %v1293_v40 = vadd.f32 %v3851_v35, %v1274_v12  ;;  %v1364_v42 = vmax.f32 %v1324_v63, %v1344_v48  ;;  %v3305_v12 = vld [vmem:[#allocation2 + $0x80] sm:$0xff] }
 0x471   :  { %v1337_v4 = vmul.f32 0.2, %v1293_v40  ;;  %v3887_v50 = vadd.f32 %v3299_v62, %v1356_v7 }
 0x472   :  { %v1282_v47 = vpop.permute.xlu1 %1281  ;;  %1411 = vmax.xlane.f32.xlu1 %v1410_v10  ;;  %1414 = vmax.xlane.f32.xlu0 %v1413_v59  ;;  %v3306_v10 = vld [vmem:[#allocation2 + $0x90] sm:$0xff] }
 0x473   :  { %v1357_v61 = vmax.f32 %v1293_v40, %v1337_v4  ;;  %v1295_v26 = vadd.f32 %v3851_v35, %v1282_v47  ;;  %v1416_v53 = vsel %vm413_vm2, %v3887_v50, -inf  ;;  %v3921_v59 = vadd.f32 %v3306_v10, %v1364_v42  ;;  %v3307_v47 = vld [vmem:[#allocation2 + $0x88] sm:$0xff] }
 0x475   :  { %v1339_v3 = vmul.f32 0.2, %v1295_v26  ;;  %v3892_v56 = vadd.f32 %v3300_v57, %v1357_v61 }
 0x476   :  { %v1286_v24 = vpop.permute.xlu1 %1285  ;;  %1417 = vmax.xlane.f32.xlu1 %v1416_v53 }
 0x477   :  { %v1359_v5 = vmax.f32 %v1295_v26, %v1339_v3  ;;  %v1296_v2 = vadd.f32 %v3851_v35, %v1286_v24  ;;  %v1419_v22 = vsel %vm413_vm2, %v3892_v56, -inf  ;;  %v3303_v35 = vld [vmem:[#allocation2 + $0x78] sm:$0xff]  ;;  %v1440_v26 = vsel %vm413_vm2, %v3921_v59, -inf }
 0x478   :  { %1420 = vmax.xlane.f32.xlu0 %v1419_v22  ;;  %v3906_v32 = vadd.f32 %v3303_v35, %v1361_v11 }
 0x479   :  { %v1340_v28 = vmul.f32 0.2, %v1296_v2  ;;  %v3902_v55 = vadd.f32 %v3302_v6, %v1359_v5 }
 0x47a   :  { %1423 = vmax.xlane.f32.xlu1 %v1422_v30  ;;  %v1431_v9 = vsel %vm413_vm2, %v3906_v32, -inf }
 0x47b   :  { %v1360_v21 = vmax.f32 %v1296_v2, %v1340_v28  ;;  %v1303_v51 = vpop.permute.xlu1 %1302  ;;  %v1425_v31 = vsel %vm413_vm2, %v3902_v55, -inf }
 0x47c   :  { %v1322_v19 = vadd.f32 %v3870_v41, %v1303_v51  ;;  %1426 = vmax.xlane.f32.xlu0 %v1425_v31 }
 0x47d   :  { %v3909_v27 = vadd.f32 %v3304_v58, %v1360_v21 }
 0x47e   :  { %v1342_v15 = vmul.f32 0.2, %v1322_v19 }
 0x47f   :  { %v1307_v49 = vpop.permute.xlu1 %1306  ;;  %v1428_v20 = vsel %vm413_vm2, %v3909_v27, -inf }
 0x480   :  { %v1362_v0 = vmax.f32 %v1322_v19, %v1342_v15  ;;  %v1323_v23 = vadd.f32 %v3870_v41, %v1307_v49  ;;  %1429 = vmax.xlane.f32.xlu1 %v1428_v20  ;;  %1432 = vmax.xlane.f32.xlu0 %v1431_v9 }
 0x482   :  { %v1343_v13 = vmul.f32 0.2, %v1323_v23  ;;  %v3916_v18 = vadd.f32 %v3305_v12, %v1362_v0 }
 0x483   :  { %v1315_v7 = vpop.permute.xlu1 %1314 }
 0x484   :  { %v1363_v40 = vmax.f32 %v1323_v23, %v1343_v13  ;;  %v1325_v1 = vadd.f32 %v3870_v41, %v1315_v7  ;;  %v1434_v4 = vsel %vm413_vm2, %v3916_v18, -inf  ;;  %v3308_v41 = vld [vmem:[#allocation2 + $0x98] sm:$0xff] }
 0x485   :  { %1435 = vmax.xlane.f32.xlu1 %v1434_v4 }
 0x486   :  { %v1345_v62 = vmul.f32 0.2, %v1325_v1  ;;  %v3923_v34 = vadd.f32 %v3307_v47, %v1363_v40 }
 0x488   :  { %v1365_v61 = vmax.f32 %v1325_v1, %v1345_v62  ;;  %v1437_v17 = vsel %vm413_vm2, %v3923_v34, -inf }
 0x489   :  { %1441 = vmax.xlane.f32.xlu1 %v1440_v26  ;;  %1438 = vmax.xlane.f32.xlu0 %v1437_v17 }
 0x48a   :  { %v3929_v3 = vadd.f32 %v3308_v41, %v1365_v61 }
 0x48c   :  { %v1443_v53 = vsel %vm413_vm2, %v3929_v3, -inf }
 0x48d   :  { %1444 = vmax.xlane.f32.xlu0 %v1443_v53 }
 0x4d4   :  { %v1388_v57 = vpop.xlane.xlu0 %1387 }
 0x4d5   :  { %v1446_v37 = vsub.f32 %v3833_v54, %v1388_v57 }
 0x4d7   :  { %v1466_v24 = vmul.f32 1.442695, %v1446_v37 }
 0x4d9   :  { %3159 = vpow2.f32 %v1466_v24 }
 0x4da   :  { %v1391_v11 = vpop.xlane.xlu1 %1390 }
 0x4db   :  { %v1447_v5 = vsub.f32 %v3837_v25, %v1391_v11 }
 0x4dd   :  { %v1468_v2 = vmul.f32 1.442695, %v1447_v5 }
 0x4df   :  { %3161 = vpow2.f32 %v1468_v2 }
 0x4e4   :  { %v1394_v22 = vpop.xlane.xlu0 %1393 }
 0x4e5   :  { %v1448_v63 = vsub.f32 %v3843_v36, %v1394_v22 }
 0x4e6   :  { %v3160_v28 = vpop.eup %3159 }
 0x4e7   :  { %v1470_v30 = vmul.f32 1.442695, %v1448_v63  ;;  %2934 = vmatprep.mubr.msk.f32.mxu1 %vm413_vm2, %v3160_v28  ;;  %v1506_v6 = vsel %vm413_vm2, %v3160_v28, 0.0 }
 0x4e8   :  { %1507 = vadd.xlane.f32.xlu1 %v1506_v6 }
 0x4e9   :  { %3163 = vpow2.f32 %v1470_v30 }
 0x4ec   :  { %v3938_v21 = vpop.eup %3161 }
 0x4ed   :  { %2935 = vmatmul.mubr.msk.f32.vlgmr.msra.gmra.mxu1 %vm413_vm2, %v3938_v21 }
 0x4ef   :  { %v1397_v54 = vpop.xlane.xlu0 %1396 }
 0x4f0   :  { %v1449_v25 = vsub.f32 %v3847_v43, %v1397_v54 }
 0x4f2   :  { %v1472_v51 = vmul.f32 1.442695, %v1449_v25 }
 0x4f3   :  { %v1400_v31 = vpop.xlane.xlu1 %1399  ;;  %v1403_v35 = vpop.xlane.xlu0 %1402 }
 0x4f4   :  { %3165 = vpow2.f32 %v1472_v51  ;;  %v1450_v36 = vsub.f32 %v3857_v8, %v1400_v31  ;;  %v1451_v48 = vsub.f32 %v3853_v46, %v1403_v35 }
 0x4f6   :  { %v3945_v19 = vpop.eup %3163  ;;  %v1474_v58 = vmul.f32 1.442695, %v1450_v36  ;;  %v1476_v15 = vmul.f32 1.442695, %v1451_v48 }
 0x4f7   :  { %v1406_v49 = vpop.xlane.xlu1 %1405  ;;  %v1409_v20 = vpop.xlane.xlu0 %1408  ;;  %2937 = vmatprep.mubr.msk.f32.mxu1 %vm413_vm2, %v3945_v19 }
 0x4f8   :  { %3167 = vpow2.f32 %v1474_v58  ;;  %v1452_v43 = vsub.f32 %v3860_v44, %v1406_v49  ;;  %v1453_v9 = vsub.f32 %v3866_v38, %v1409_v20 }
 0x4f9   :  { %3169 = vpow2.f32 %v1476_v15 }
 0x4fa   :  { %v1478_v42 = vmul.f32 1.442695, %v1452_v43  ;;  %v1480_v0 = vmul.f32 1.442695, %v1453_v9 }
 0x4fb   :  { %v1412_v8 = vpop.xlane.xlu1 %1411  ;;  %v1415_v23 = vpop.xlane.xlu0 %1414 }
 0x4fc   :  { %3171 = vpow2.f32 %v1478_v42  ;;  %v1454_v46 = vsub.f32 %v3877_v45, %v1412_v8  ;;  %v1455_v13 = vsub.f32 %v3879_v16, %v1415_v23 }
 0x4fd   :  { %3173 = vpow2.f32 %v1480_v0  ;;  %v1509_v0 = vsel %vm413_vm2, %v3938_v21, 0.0  ;;  %v1512_v21 = vsel %vm413_vm2, %v3945_v19, 0.0 }
 0x4fe   :  { %v1482_v12 = vmul.f32 1.442695, %v1454_v46  ;;  %v1484_v7 = vmul.f32 1.442695, %v1455_v13 }
 0x4ff   :  { %v1418_v40 = vpop.xlane.xlu1 %1417 }
 0x500   :  { %3175 = vpow2.f32 %v1482_v12  ;;  %v1456_v1 = vsub.f32 %v3887_v50, %v1418_v40 }
 0x501   :  { %v3954_v44 = vpop.eup %3165  ;;  %3177 = vpow2.f32 %v1484_v7  ;;  %v1421_v38 = vpop.xlane.xlu0 %1420 }
 0x502   :  { %v1486_v4 = vmul.f32 1.442695, %v1456_v1  ;;  %v1457_v10 = vsub.f32 %v3892_v56, %v1421_v38  ;;  %2938 = vmatmul.mubr.msk.f32.gmra.mxu1 %vm413_vm2, %v3954_v44 }
 0x503   :  { %v1424_v45 = vpop.xlane.xlu1 %1423 }
 0x504   :  { %3179 = vpow2.f32 %v1486_v4  ;;  %v1488_v16 = vmul.f32 1.442695, %v1457_v10  ;;  %v1458_v62 = vsub.f32 %v3894_v60, %v1424_v45  ;;  %v1515_v4 = vsel %vm413_vm2, %v3954_v44, 0.0  ;;  %v1994_v44 = vld [vmem:[#allocation2 + $0xf8] sm:$0xff] }
 0x505   :  { %v3960_v47 = vpop.eup %3167  ;;  %v1427_v61 = vpop.xlane.xlu0 %1426 }
 0x506   :  { %v3170_v26 = vpop.eup %3169  ;;  %3181 = vpow2.f32 %v1488_v16  ;;  %v1490_v50 = vmul.f32 1.442695, %v1458_v62  ;;  %v1459_v17 = vsub.f32 %v3902_v55, %v1427_v61  ;;  %2940 = vmatprep.mubr.msk.f32.mxu1 %vm413_vm2, %v3960_v47  ;;  %v1518_v45 = vsel %vm413_vm2, %v3960_v47, 0.0  ;;  %v1996_v62 = vld [vmem:[#allocation2 + $0x108] sm:$0xff]  ;;  %v1995_v61 = vld [vmem:[#allocation2 + $0x100] sm:$0xff] }
 0x507   :  { %2941 = vmatmul.mubr.msk.f32.gmra.mxu1 %vm413_vm2, %v3170_v26  ;;  %v1521_v56 = vsel %vm413_vm2, %v3170_v26, 0.0  ;;  %2965 = vmatpush3.msra.mxu0 %v1996_v62  ;;  %v1993_v26 = vld [vmem:[#allocation2 + $0xf0] sm:$0xff] }
 0x508   :  { %3183 = vpow2.f32 %v1490_v50  ;;  %v1492_v41 = vmul.f32 1.442695, %v1459_v17  ;;  %1522 = vadd.xlane.f32.xlu0 %v1521_v56  ;;  %2966 = vmatprep.subr.mxu0 %v4387_v52  ;;  %v4365_v50 = vmov 14  }
 0x509   :  { %v3172_v53 = vpop.eup %3171  ;;  %v1430_v60 = vpop.xlane.xlu1 %1429  ;;  %2967 = vmatpush3.msra.mxu0 %v1995_v61  ;;  %3063 = vset.pattern.permute.xlu1 %v4365_v50 }
 0x50a   :  { %v1433_v57 = vpop.xlane.xlu0 %1432  ;;  %v3174_v37 = vpop.eup %3173  ;;  %3185 = vpow2.f32 %v1492_v41  ;;  %v1460_v24 = vsub.f32 %v3909_v27, %v1430_v60  ;;  %2943 = vmatprep.mubr.msk.f32.mxu1 %vm413_vm2, %v3172_v53  ;;  %v1524_v58 = vsel %vm413_vm2, %v3172_v53, 0.0  ;;  %2968 = vmatprep.subr.mxu0 %v4387_v52 }
 0x50b   :  { %v1461_v11 = vsub.f32 %v3906_v32, %v1433_v57  ;;  %2944 = vmatmul.mubr.msk.f32.gmra.mxu1 %vm413_vm2, %v3174_v37  ;;  %2969 = vmatpush3.msra.mxu0 %v1994_v44 }
 0x50c   :  { %v1494_v55 = vmul.f32 1.442695, %v1460_v24  ;;  %2970 = vmatprep.subr.mxu0 %v4387_v52  ;;  %3064 = vset.pattern.permute.xlu0 %v4365_v50  ;;  %v1911_v50 = vld [vmem:[#allocation2 + $0xe8] sm:$0xff] }
 0x50d   :  { %v1496_v5 = vmul.f32 1.442695, %v1461_v11  ;;  %v3176_v2 = vpop.eup %3175  ;;  %2971 = vmatpush3.msra.mxu0 %v1993_v26 }
 0x50e   :  { %v3971_v22 = vpop.eup %3177  ;;  %3187 = vpow2.f32 %v1494_v55  ;;  %v1436_v63 = vpop.xlane.xlu1 %1435  ;;  %2946 = vmatprep.mubr.msk.f32.mxu1 %vm413_vm2, %v3176_v2  ;;  %v1530_v12 = vsel %vm413_vm2, %v3176_v2, 0.0  ;;  %2987 = vmatprep.subr.mxu0 %v4387_v52 }
 0x50f   :  { %3189 = vpow2.f32 %v1496_v5  ;;  %v1462_v28 = vsub.f32 %v3916_v18, %v1436_v63  ;;  %2947 = vmatmul.mubr.msk.f32.gmra.mxu1 %vm413_vm2, %v3971_v22  ;;  %v1533_v38 = vsel %vm413_vm2, %v3971_v22, 0.0 }
 0x511   :  { %v3180_v32 = vpop.eup %3179  ;;  %v1498_v27 = vmul.f32 1.442695, %v1462_v28 }
 0x512   :  { %v1442_v30 = vpop.xlane.xlu1 %1441  ;;  %2949 = vmatprep.mubr.msk.f32.mxu1 %vm413_vm2, %v3180_v32  ;;  %v1439_v6 = vpop.xlane.xlu0 %1438  ;;  %v1536_v54 = vsel %vm413_vm2, %v3180_v32, 0.0 }
 0x513   :  { %v3182_v25 = vpop.eup %3181  ;;  %3191 = vpow2.f32 %v1498_v27  ;;  %v1464_v51 = vsub.f32 %v3921_v59, %v1442_v30  ;;  %v1463_v31 = vsub.f32 %v3923_v34, %v1439_v6  ;;  %1537 = vadd.xlane.f32.xlu1 %v1536_v54 }
 0x514   :  { %2950 = vmatmul.mubr.msk.f32.gmra.mxu1 %vm413_vm2, %v3182_v25  ;;  %v1539_v34 = vsel %vm413_vm2, %v3182_v25, 0.0 }
 0x515   :  { %v3184_v18 = vpop.eup %3183  ;;  %v1502_v35 = vmul.f32 1.442695, %v1464_v51  ;;  %v1500_v36 = vmul.f32 1.442695, %v1463_v31 }
 0x516   :  { %2952 = vmatprep.mubr.msk.f32.mxu1 %vm413_vm2, %v3184_v18  ;;  %v1445_v48 = vpop.xlane.xlu0 %1444  ;;  %v1542_v8 = vsel %vm413_vm2, %v3184_v18, 0.0 }
 0x517   :  { %v3186_v15 = vpop.eup %3185  ;;  %3193 = vpow2.f32 %v1502_v35  ;;  %v1465_v49 = vsub.f32 %v3929_v3, %v1445_v48  ;;  %1525 = vadd.xlane.f32.xlu1 %v1524_v58  ;;  %v1527_v3 = vsel %vm413_vm2, %v3174_v37, 0.0 }
 0x518   :  { %3195 = vpow2.f32 %v1500_v36  ;;  %2953 = vmatmul.mubr.msk.f32.gmra.mxu1 %vm413_vm2, %v3186_v15  ;;  %v1545_v40 = vsel %vm413_vm2, %v3186_v15, 0.0 }
 0x519   :  { %v1504_v59 = vmul.f32 1.442695, %v1465_v49 }
 0x51b   :  { %v3188_v20 = vpop.eup %3187  ;;  %3197 = vpow2.f32 %v1504_v59  ;;  %1540 = vadd.xlane.f32.xlu1 %v1539_v34 }
 0x51c   :  { %v3190_v43 = vpop.eup %3189  ;;  %2955 = vmatprep.mubr.msk.f32.mxu1 %vm413_vm2, %v3188_v20  ;;  %v1548_v10 = vsel %vm413_vm2, %v3188_v20, 0.0 }
 0x51d   :  { %2956 = vmatmul.mubr.msk.f32.gmra.mxu1 %vm413_vm2, %v3190_v43  ;;  %v1551_v9 = vsel %vm413_vm2, %v3190_v43, 0.0 }
 0x51e   :  { %1552 = vadd.xlane.f32.xlu0 %v1551_v9 }
 0x51f   :  { %1528 = vadd.xlane.f32.xlu1 %v1527_v3 }
 0x520   :  { %v3192_v42 = vpop.eup %3191 }
 0x521   :  { %2958 = vmatprep.mubr.msk.f32.mxu1 %vm413_vm2, %v3192_v42  ;;  %v1554_v13 = vsel %vm413_vm2, %v3192_v42, 0.0 }
 0x522   :  { %1510 = vadd.xlane.f32.xlu0 %v1509_v0 }
 0x523   :  { %1543 = vadd.xlane.f32.xlu1 %v1542_v8 }
 0x524   :  { %v3194_v23 = vpop.eup %3193 }
 0x525   :  { %v3196_v46 = vpop.eup %3195  ;;  %v1560_v19 = vsel %vm413_vm2, %v3194_v23, 0.0 }
 0x526   :  { %1555 = vadd.xlane.f32.xlu0 %v1554_v13  ;;  %2959 = vmatmul.mubr.msk.f32.gmra.mxu1 %vm413_vm2, %v3196_v46  ;;  %v1557_v1 = vsel %vm413_vm2, %v3196_v46, 0.0 }
 0x527   :  { %2961 = vmatprep.mubr.msk.f32.mxu1 %vm413_vm2, %v3194_v23  ;;  %1531 = vadd.xlane.f32.xlu1 %v1530_v12 }
 0x528   :  { %v3198_v7 = vpop.eup %3197 }
 0x529   :  { %v1563_v16 = vsel %vm413_vm2, %v3198_v7, 0.0 }
 0x52a   :  { %1513 = vadd.xlane.f32.xlu0 %v1512_v21  ;;  %2962 = vmatmul.mubr.msk.f32.gmra.mxu1 %vm413_vm2, %v3198_v7 }
 0x52b   :  { %1546 = vadd.xlane.f32.xlu1 %v1545_v40 }
 0x52e   :  { %1558 = vadd.xlane.f32.xlu0 %v1557_v1 }
 0x52f   :  { %1534 = vadd.xlane.f32.xlu1 %v1533_v38 }
 0x532   :  { %1516 = vadd.xlane.f32.xlu0 %v1515_v4 }
 0x533   :  { %1549 = vadd.xlane.f32.xlu1 %v1548_v10 }
 0x536   :  { %1561 = vadd.xlane.f32.xlu0 %v1560_v19 }
 0x53a   :  { %1519 = vadd.xlane.f32.xlu0 %v1518_v45 }
 0x53e   :  { %1564 = vadd.xlane.f32.xlu0 %v1563_v16 }
 0x571   :  { %v4017_v47 = vpop.xlane.xlu1 %1507 }
 0x572   :  { %v1566_v2 = vmax.f32 %v4017_v47, 1e-30 }
 0x574   :  { %3199 = vrcp.f32 %v1566_v2 }
 0x581   :  { %v3200_v8 = vpop.eup %3199 }
 0x582   :  { %v1606_v7 = vmul.f32 %v3200_v8, %v1566_v2 }
 0x584   :  { %v1626_v16 = vsub.f32 2.0, %v1606_v7 }
 0x591   :  { %v4025_v41 = vpop.xlane.xlu0 %1522 }
 0x592   :  { %v1571_v22 = vmax.f32 %v4025_v41, 1e-30 }
 0x594   :  { %3201 = vrcp.f32 %v1571_v22 }
 0x59c   :  { %v4021_v17 = vpop.xlane.xlu1 %1537 }
 0x59d   :  { %v1576_v63 = vmax.f32 %v4021_v17, 1e-30 }
 0x59f   :  { %3203 = vrcp.f32 %v1576_v63 }
 0x5a0   :  { %v4023_v56 = vpop.xlane.xlu1 %1525 }
 0x5a1   :  { %v1572_v27 = vmax.f32 %v4023_v56, 1e-30  ;;  %v3202_v46 = vpop.eup %3201  ;;  %v4151_v56 = vrot.slane %v1911_v50, %v3429_v29 }
 0x5a2   :  { %v1611_v62 = vmul.f32 %v3202_v46, %v1571_v22 }
 0x5a3   :  { %3205 = vrcp.f32 %v1572_v27 }
 0x5a4   :  { %v4027_v53 = vpop.xlane.xlu1 %1540 }
 0x5a5   :  { %v1577_v6 = vmax.f32 %v4027_v53, 1e-30 }
 0x5a7   :  { %v4029_v60 = vpop.xlane.xlu0 %1552 }
 0x5a8   :  { %v4031_v57 = vpop.xlane.xlu1 %1528  ;;  %v1581_v54 = vmax.f32 %v4029_v60, 1e-30  ;;  %v4164_v60 = vrot.slane %v1911_v50, %v4392_v39 }
 0x5a9   :  { %v1573_v51 = vmax.f32 %v4031_v57, 1e-30 }
 0x5ab   :  { %v4033_v37 = vpop.xlane.xlu0 %1510 }
 0x5ac   :  { %v4035_v24 = vpop.xlane.xlu1 %1543  ;;  %v1567_v30 = vmax.f32 %v4033_v37, 1e-30  ;;  %v3204_v12 = vpop.eup %3203 }
 0x5ad   :  { %v4059_v31 = vpop.f32.mrf.mxu1  ;;  %v1578_v18 = vmax.f32 %v4035_v24, 1e-30  ;;  %v1616_v61 = vmul.f32 %v3204_v12, %v1576_v63  ;;  %v1631_v63 = vsub.f32 2.0, %v1611_v62  ;;  %v4161_v62 = vrot.slane %v1911_v50, %v3434_v33 }
 0x5ae   :  { %3207 = vrcp.f32 %v1567_v30 }
 0x5af   :  { %v4037_v11 = vpop.xlane.xlu0 %1555  ;;  %3209 = vrcp.f32 %v1577_v6  ;;  %v1792_v49 = vpop.f32.mrf.mxu1 }
 0x5b0   :  { %v4039_v55 = vpop.xlane.xlu1 %1531  ;;  %v1582_v36 = vmax.f32 %v4037_v11, 1e-30  ;;  %3211 = vrcp.f32 %v1581_v54  ;;  %v4104_v21 = vpop.eup %3205 }
 0x5b1   :  { %3213 = vrcp.f32 %v1573_v51  ;;  %v4371_v15 = vmax.f32 %v4039_v55, 1e-30 }
 0x5b2   :  { %3215 = vrcp.f32 %v1578_v18 }
 0x5b3   :  { %v4041_v5 = vpop.xlane.xlu0 %1513  ;;  %3217 = vrcp.f32 %v1582_v36 }
 0x5b4   :  { %v4046_v28 = vpop.xlane.xlu1 %1546  ;;  %v1568_v48 = vmax.f32 %v4041_v5, 1e-30 }
 0x5b5   :  { %v4369_v59 = vmax.f32 %v4046_v28, 1e-30 }
 0x5b6   :  { %3219 = vrcp.f32 %v1568_v48 }
 0x5b7   :  { %v4048_v32 = vpop.xlane.xlu0 %1558  ;;  %3221 = vrcp.f32 %v4371_v15 }
 0x5b8   :  { %v4062_v35 = vpop.xlane.xlu1 %1534  ;;  %3223 = vrcp.f32 %v4369_v59  ;;  %v4368_v40 = vmax.f32 %v4048_v32, 1e-30 }
 0x5b9   :  { %v4370_v20 = vmax.f32 %v4062_v35, 1e-30  ;;  %v4396_v11 = vmax.f32 %v4062_v35, 1e-30 }
 0x5bb   :  { %v4054_v25 = vpop.xlane.xlu0 %1516  ;;  %v3208_v38 = vpop.eup %3207 }
 0x5bc   :  { %v4085_v43 = vpop.xlane.xlu1 %1549  ;;  %v4367_v3 = vmax.f32 %v4054_v25, 1e-30  ;;  %v4113_v10 = vpop.eup %3209  ;;  %v1607_v26 = vmul.f32 %v3208_v38, %v1567_v30  ;;  %v1646_v30 = vmul.f32 %v3200_v8, %v1626_v16 }
 0x5bd   :  { %v4366_v23 = vmax.f32 %v4085_v43, 1e-30  ;;  %v4117_v45 = vpop.eup %3211  ;;  %v1617_v59 = vmul.f32 %v4113_v10, %v1577_v6  ;;  %v4399_v35 = vmax.f32 %v4085_v43, 1e-30 }
 0x5be   :  { %v4119_v44 = vpop.eup %3213  ;;  %v1621_v8 = vmul.f32 %v4117_v45, %v1581_v54 }
 0x5bf   :  { %v4070_v58 = vpop.xlane.xlu0 %1561  ;;  %v4126_v41 = vpop.eup %3215  ;;  %v1613_v6 = vmul.f32 %v4119_v44, %v1573_v51  ;;  %v4172_v51 = vrot.slane %v1911_v50, %v4393_v14  ;;  %v4395_v14 = vmax.f32 %v4039_v55, 1e-30 }
 0x5c0   :  { %v4373_v37 = vmax.f32 %v4070_v58, 1e-30  ;;  %v4129_v2 = vpop.eup %3217 }
 0x5c1   :  { %v1622_v39 = vmul.f32 %v4129_v2, %v1582_v36 }
 0x5c2   :  { %v4080_v34 = vpop.f32.mrf.mxu1 }
 0x5c3   :  { %v4087_v9 = vpop.xlane.xlu0 %1519  ;;  %v3220_v22 = vpop.eup %3219 }
 0x5c4   :  { %v4372_v42 = vmax.f32 %v4087_v9, 1e-30  ;;  %v4093_v0 = vpop.f32.mrf.mxu1  ;;  %v1608_v16 = vmul.f32 %v3220_v22, %v1568_v48 }
 0x5c6   :  { %3225 = vrcp.f32 %v4372_v42 }
 0x5c7   :  { %3227 = vrcp.f32 %v4370_v20  ;;  %v2942_v13 = vpop.f32.mrf.mxu1  ;;  %v4111_v4 = vpop.xlane.xlu0 %1564  ;;  %v1627_v20 = vsub.f32 2.0, %v1607_v26 }
 0x5c8   :  { %3229 = vrcp.f32 %v4367_v3  ;;  %v4374_v47 = vmax.f32 %v4111_v4, 1e-30  ;;  %v4133_v3 = vpop.eup %3221 }
 0x5c9   :  { %v4107_v1 = vpop.f32.mrf.mxu1  ;;  %3231 = vrcp.f32 %v4366_v23  ;;  %v1636_v23 = vsub.f32 2.0, %v1616_v61  ;;  %v4145_v42 = vpop.eup %3223  ;;  %v1651_v61 = vmul.f32 %v3202_v46, %v1631_v63  ;;  %v1614_v50 = vmul.f32 %v4133_v3, %v4395_v14 }
 0x5ca   :  { %3233 = vrcp.f32 %v4368_v40  ;;  %v1612_v40 = vmul.f32 %v4104_v21, %v1572_v27  ;;  %v1891_v27 = vmul.f32 %v1792_v49, %v1646_v30  ;;  %v1618_v49 = vmul.f32 %v4126_v41, %v1578_v18 }
 0x5cb   :  { %v4115_v19 = vpop.f32.mrf.mxu1  ;;  %3235 = vrcp.f32 %v4374_v47  ;;  %v1656_v57 = vmul.f32 %v3204_v12, %v1636_v23  ;;  %v1637_v30 = vsub.f32 2.0, %v1617_v59  ;;  %v1641_v47 = vsub.f32 2.0, %v1621_v8 }
 0x5cc   :  { %3237 = vrcp.f32 %v4373_v37  ;;  %v1632_v48 = vsub.f32 2.0, %v1612_v40  ;;  %v1647_v37 = vmul.f32 %v3208_v38, %v1627_v20  ;;  %v1916_v24 = vmul.f32 %v4151_v56, %v1891_v27 }
 0x5cd   :  { %v4124_v17 = vpop.f32.mrf.mxu1  ;;  %v4394_v18 = vmax.f32 %v4087_v9, 1e-30  ;;  %v1896_v63 = vmul.f32 %v2942_v13, %v1651_v61  ;;  %v1633_v12 = vsub.f32 2.0, %v1613_v6  ;;  %v1628_v59 = vsub.f32 2.0, %v1608_v16 }
 0x5ce   :  { %v1638_v36 = vsub.f32 2.0, %v1618_v49  ;;  %v4397_v20 = vmax.f32 %v4046_v28, 1e-30  ;;  %v4398_v9 = vmax.f32 %v4054_v25, 1e-30  ;;  %v1642_v61 = vsub.f32 2.0, %v1622_v39 }
 0x5cf   :  { %v4131_v7 = vpop.f32.mrf.mxu1  ;;  %v1892_v6 = vmul.f32 %v4059_v31, %v1647_v37  ;;  %v1652_v55 = vmul.f32 %v4104_v21, %v1632_v48  ;;  %v1657_v16 = vmul.f32 %v4113_v10, %v1637_v30  ;;  %v1925_v28 = vmul.f32 %v4161_v62, %v1896_v63 }
 0x5d0   :  { %v1619_v38 = vmul.f32 %v4145_v42, %v4397_v20  ;;  %v1661_v25 = vmul.f32 %v4117_v45, %v1641_v47  ;;  %v1634_v20 = vsub.f32 2.0, %v1614_v50  ;;  %v1653_v39 = vmul.f32 %v4119_v44, %v1633_v12 }
 0x5d1   :  { %v4143_v15 = vpop.f32.mrf.mxu1  ;;  %v1658_v10 = vmul.f32 %v4126_v41, %v1638_v36  ;;  %v1917_v43 = vmul.f32 %v4151_v56, %v1892_v6  ;;  %v4400_v48 = vmax.f32 %v4048_v32, 1e-30  ;;  %v1662_v45 = vmul.f32 %v4129_v2, %v1642_v61 }
 0x5d2   :  { %v1639_v31 = vsub.f32 2.0, %v1619_v38  ;;  %v1930_v50 = vadd.f32 %v1925_v28, %v1916_v24  ;;  %v1897_v41 = vmul.f32 %v4124_v17, %v1652_v55  ;;  %v1654_v38 = vmul.f32 %v4133_v3, %v1634_v20 }
 0x5d3   :  { %v3226_v53 = vpop.eup %3225 }
 0x5d4   :  { %v3228_v54 = vpop.eup %3227  ;;  %v4169_v26 = vpop.f32.mrf.mxu1  ;;  %v1610_v46 = vmul.f32 %v3226_v53, %v4394_v18  ;;  %v1926_v55 = vmul.f32 %v4161_v62, %v1897_v41 }
 0x5d5   :  { %v3230_v5 = vpop.eup %3229  ;;  %v1615_v40 = vmul.f32 %v3228_v54, %v4396_v11 }
 0x5d6   :  { %v1842_v33 = vpop.f32.mrf.mxu1  ;;  %v3232_v23 = vpop.eup %3231  ;;  %v1609_v8 = vmul.f32 %v3230_v5, %v4398_v9  ;;  %v1630_v14 = vsub.f32 2.0, %v1610_v46  ;;  %v1898_v46 = vmul.f32 %v4115_v19, %v1653_v39  ;;  %v1659_v19 = vmul.f32 %v4145_v42, %v1639_v31 }
 0x5d7   :  { %v1901_v13 = vmul.f32 %v1842_v33, %v1656_v57  ;;  %v3234_v18 = vpop.eup %3233  ;;  %v1620_v49 = vmul.f32 %v3232_v23, %v4399_v35  ;;  %v1635_v33 = vsub.f32 2.0, %v1615_v40  ;;  %v1648_v57 = vmul.f32 %v3220_v22, %v1628_v59 }
 0x5d8   :  { %v2954_v27 = vpop.f32.mrf.mxu1  ;;  %v1629_v37 = vsub.f32 2.0, %v1609_v8  ;;  %v1623_v30 = vmul.f32 %v3234_v18, %v4400_v48  ;;  %v3236_v47 = vpop.eup %3235  ;;  %v1650_v44 = vmul.f32 %v3226_v53, %v1630_v14  ;;  %v1927_v53 = vmul.f32 %v4161_v62, %v1898_v46 }
 0x5d9   :  { %v1939_v21 = vmul.f32 %v4164_v60, %v1901_v13  ;;  %v1640_v22 = vsub.f32 2.0, %v1620_v49  ;;  %v3238_v59 = vpop.eup %3237  ;;  %v1893_v40 = vmul.f32 %v4093_v0, %v1648_v57  ;;  %v1655_v36 = vmul.f32 %v3228_v54, %v1635_v33 }
 0x5da   :  { %v1852_v11 = vpop.f32.mrf.mxu1  ;;  %v1649_v32 = vmul.f32 %v3230_v5, %v1629_v37  ;;  %v1643_v2 = vsub.f32 2.0, %v1623_v30  ;;  %v4401_v13 = vmax.f32 %v4111_v4, 1e-30  ;;  %v4402_v0 = vmax.f32 %v4070_v58, 1e-30 }
 0x5db   :  { %v1944_v9 = vadd.f32 %v1939_v21, %v1930_v50  ;;  %v1903_v61 = vmul.f32 %v1852_v11, %v1658_v10  ;;  %v1895_v54 = vmul.f32 %v4107_v1, %v1650_v44  ;;  %v1660_v5 = vmul.f32 %v3232_v23, %v1640_v22 }
 0x5dc   :  { %v1625_v24 = vmul.f32 %v3236_v47, %v4401_v13  ;;  %v1624_v17 = vmul.f32 %v3238_v59, %v4402_v0  ;;  %v1918_v42 = vmul.f32 %v4151_v56, %v1893_v40  ;;  %v1900_v35 = vmul.f32 %v4131_v7, %v1655_v36 }
 0x5dd   :  { %v2957_v63 = vpop.f32.mrf.mxu1  ;;  %v1902_v4 = vmul.f32 %v4169_v26, %v1657_v16  ;;  %v1894_v49 = vmul.f32 %v4080_v34, %v1649_v32  ;;  %v1899_v14 = vmul.f32 %v4143_v15, %v1654_v38  ;;  %v1663_v23 = vmul.f32 %v3234_v18, %v1643_v2 }
 0x5de   :  { %v1906_v12 = vmul.f32 %v2957_v63, %v1661_v25  ;;  %v1645_v11 = vsub.f32 2.0, %v1625_v24  ;;  %v1932_v1 = vadd.f32 %v1927_v53, %v1918_v42  ;;  %v1941_v25 = vmul.f32 %v4164_v60, %v1903_v61 }
 0x5df   :  { %v1862_v6 = vpop.f32.mrf.mxu1  ;;  %v1644_v20 = vsub.f32 2.0, %v1624_v17  ;;  %v1920_v33 = vmul.f32 %v4151_v56, %v1895_v54  ;;  %v1904_v57 = vmul.f32 %v2954_v27, %v1659_v19  ;;  %v1931_v31 = vadd.f32 %v1926_v55, %v1917_v43 }
 0x5e0   :  { %v1953_v8 = vmul.f32 %v4172_v51, %v1906_v12  ;;  %v1905_v28 = vmul.f32 %v1862_v6, %v1660_v5  ;;  %v1929_v26 = vmul.f32 %v4161_v62, %v1900_v35  ;;  %v1940_v34 = vmul.f32 %v4164_v60, %v1902_v4 }
 0x5e1   :  { %v1919_v16 = vmul.f32 %v4151_v56, %v1894_v49  ;;  %v1928_v37 = vmul.f32 %v4161_v62, %v1899_v14  ;;  %v1946_v10 = vadd.f32 %v1941_v25, %v1932_v1  ;;  %v1665_v30 = vmul.f32 %v3236_v47, %v1645_v11  ;;  %v2102_v11 = vld [vmem:[#allocation2 + $0x110] sm:$0xff] }
 0x5e2   :  { %v4216_v3 = vadd.f32 %v1953_v8, %v1944_v9  ;;  %v1943_v21 = vmul.f32 %v4164_v60, %v1905_v28  ;;  %v1934_v46 = vadd.f32 %v1929_v26, %v1920_v33  ;;  %v1942_v43 = vmul.f32 %v4164_v60, %v1904_v57 }
 0x5e3   :  { %v1664_v22 = vmul.f32 %v3238_v59, %v1644_v20  ;;  %v1945_v50 = vadd.f32 %v1940_v34, %v1931_v31  ;;  %v1933_v62 = vadd.f32 %v1928_v37, %v1919_v16 }
 0x5e4   :  { %v1968_v58 = vmin.f32 %v4216_v3, 0.0  ;;  %v1948_v40 = vadd.f32 %v1943_v21, %v1934_v46  ;;  %vm1963_vm9 = vcmp.gt.f32.partialorder %v4216_v3, 0.0 }
 0x5e6   :  { %v1973_v39 = vmul.f32 1.442695, %v1968_v58  ;;  %v2960_v7 = vpop.f32.mrf.mxu1 }
 0x5e7   :  { %v1908_v15 = vmul.f32 %v2960_v7, %v1663_v23  ;;  %v3341_v23 = vmov 15  }
 0x5e8   :  { %3239 = vpow2.f32 %v1973_v39  ;;  %v1872_v18 = vpop.f32.mrf.mxu1  ;;  %v4403_v39 = vmov 14  }
 0x5e9   :  { %v1955_v48 = vmul.f32 %v4172_v51, %v1908_v15  ;;  %v1907_v27 = vmul.f32 %v1872_v18, %v1662_v45  ;;  %v1947_v45 = vadd.f32 %v1942_v43, %v1933_v62  ;;  %v2260_v62 = vld [vmem:[#allocation2 + $0x8] sm:$0xff] }
 0x5ea   :  { %v2963_v63 = vpop.f32.mrf.mxu1 }
 0x5eb   :  { %v1960_v44 = vadd.f32 %v1955_v48, %v1946_v10  ;;  %v1954_v56 = vmul.f32 %v4172_v51, %v1907_v27  ;;  %v1910_v12 = vmul.f32 %v2963_v63, %v1665_v30  ;;  %v2259_v48 = vld [vmem:[#allocation2] sm:$0xff] }
 0x5ec   :  { %v1882_v41 = vpop.f32.mrf.mxu1 }
 0x5ed   :  { %v1970_v36 = vmin.f32 %v1960_v44, 0.0  ;;  %v1959_v38 = vadd.f32 %v1954_v56, %v1945_v50  ;;  %v1957_v32 = vmul.f32 %v4172_v51, %v1910_v12  ;;  %v1909_v9 = vmul.f32 %v1882_v41, %v1664_v22  ;;  %v4404_v50 = vld [vmem:[#allocation5_spill] sm:$0xff] }
 0x5ee   :  { %vm1965_vm12 = vcmp.gt.f32.partialorder %v1960_v44, 0.0 }
 0x5ef   :  { %v1977_v47 = vmul.f32 1.442695, %v1970_v36  ;;  %v1969_v19 = vmin.f32 %v1959_v38, 0.0  ;;  %v1962_v8 = vadd.f32 %v1957_v32, %v1948_v40  ;;  %v1956_v60 = vmul.f32 %v4172_v51, %v1909_v9 }
 0x5f0   :  { %vm1964_vm10 = vcmp.gt.f32.partialorder %v1959_v38, 0.0 }
 0x5f1   :  { %v1975_v59 = vmul.f32 1.442695, %v1969_v19  ;;  %v1972_v2 = vmin.f32 %v1962_v8, 0.0  ;;  %v1961_v13 = vadd.f32 %v1956_v60, %v1947_v45  ;;  %3241 = vpow2.f32 %v1977_v47  ;;  %v2261_v19 = vld [vmem:[#allocation2 + $0x10] sm:$0xff] }
 0x5f2   :  { %vm1967_vm11 = vcmp.gt.f32.partialorder %v1962_v8, 0.0 }
 0x5f3   :  { %3243 = vpow2.f32 %v1975_v59  ;;  %v1981_v24 = vmul.f32 1.442695, %v1972_v2  ;;  %v1971_v53 = vmin.f32 %v1961_v13, 0.0  ;;  %vm1966_vm13 = vcmp.gt.f32.partialorder %v1961_v13, 0.0 }
 0x5f5   :  { %v3240_v61 = vpop.eup %3239  ;;  %3245 = vpow2.f32 %v1981_v24  ;;  %v1979_v6 = vmul.f32 1.442695, %v1971_v53 }
 0x5f6   :  { %v2682_v0 = vadd.f32 -1.0, %v3240_v61 }
 0x5f7   :  { %3247 = vpow2.f32 %v1979_v6  ;;  %v2262_v6 = vld [vmem:[#allocation2 + $0x18] sm:$0xff] }
 0x5f8   :  { %v1988_v17 = vsel %vm1963_vm9, %v4216_v3, %v2682_v0 }
 0x5f9   :  { %2973 = vmatmul.mubr.msk.f32.vlgmr.msra.gmra.mxu0 %vm1025_vm3, %v1988_v17 }
 0x5fa   :  { %2975 = vmatprep.mubr.msk.f32.mxu0 %vm3335_vm0, %v4387_v52 }
 0x5fe   :  { %v3242_v51 = vpop.eup %3241 }
 0x5ff   :  { %v2684_v4 = vadd.f32 -1.0, %v3242_v51 }
 0x600   :  { %v3244_v54 = vpop.eup %3243 }
 0x601   :  { %v2683_v5 = vadd.f32 -1.0, %v3244_v54  ;;  %v1990_v58 = vsel %vm1965_vm12, %v1960_v44, %v2684_v4  ;;  %v2263_v4 = vld [vmem:[#allocation2 + $0x20] sm:$0xff] }
 0x602   :  { %v3246_v42 = vpop.eup %3245 }
 0x603   :  { %v1989_v55 = vsel %vm1964_vm10, %v1959_v38, %v2683_v5  ;;  %v2686_v35 = vadd.f32 -1.0, %v3246_v42  ;;  %v2264_v42 = vld [vmem:[#allocation2 + $0x28] sm:$0xff] }
 0x604   :  { %v3248_v49 = vpop.eup %3247  ;;  %2976 = vmatmul.mubr.msk.f32.gmra.mxu0 %vm1025_vm3, %v1989_v55 }
 0x605   :  { %v1992_v14 = vsel %vm1967_vm11, %v1962_v8, %v2686_v35  ;;  %2978 = vmatprep.mubr.msk.f32.mxu0 %vm3335_vm0, %v4387_v52  ;;  %v2685_v3 = vadd.f32 -1.0, %v3248_v49 }
 0x606   :  { %2988 = vmatpush3.xpose.msk.msra.mxu0 %vm1025_vm3, %v1992_v14 }
 0x607   :  { %2989 = vmatprep.subr.mxu0 %v4387_v52  ;;  %v1991_v28 = vsel %vm1966_vm13, %v1961_v13, %v2685_v3 }
 0x608   :  { %2979 = vmatmul.mubr.msk.f32.gmra.mxu0 %vm1025_vm3, %v1990_v58 }
 0x609   :  { %2981 = vmatprep.mubr.msk.f32.mxu0 %vm3335_vm0, %v4387_v52 }
 0x60a   :  { %2990 = vmatpush3.xpose.msk.msra.mxu0 %vm1025_vm3, %v1991_v28 }
 0x60b   :  { %2991 = vmatprep.subr.mxu0 %v4387_v52 }
 0x60c   :  { %2982 = vmatmul.mubr.msk.f32.gmra.mxu0 %vm1025_vm3, %v1991_v28 }
 0x60d   :  { %2984 = vmatprep.mubr.msk.f32.mxu0 %vm3335_vm0, %v4387_v52 }
 0x60e   :  { %2992 = vmatpush3.xpose.msk.msra.mxu0 %vm1025_vm3, %v1990_v58 }
 0x60f   :  { %2993 = vmatprep.subr.mxu0 %v4387_v52 }
 0x610   :  { %2985 = vmatmul.mubr.msk.f32.gmra.mxu0 %vm1025_vm3, %v1992_v14 }
 0x611   :  { %2997 = vmatprep.mubr.msk.f32.mxu0 %vm3335_vm0, %v4387_v52 }
 0x612   :  { %2994 = vmatpush3.xpose.msk.msra.mxu0 %vm1025_vm3, %v1989_v55 }
 0x613   :  { %2995 = vmatprep.subr.mxu0 %v4387_v52 }
 0x616   :  { %2996 = vmatpush3.xpose.msk.msra.mxu0 %vm1025_vm3, %v1988_v17 }
 0x619   :  { %2998 = vmatmul.mubr.msk.f32.vlgmr.msra.gmra.mxu0 %vm1025_vm3, %v2102_v11 }
 0x6b9   :  { %v2078_v1 = vpop.f32.mrf.mxu0 }
 0x6ba   :  { %2178 = vperm.xlu1 %3063, %v2078_v1  }
 0x6bb   :  { %v2974_v25 = vpop.f32.mrf.mxu0 }
 0x6bc   :  { %v2265_v25 = vld [vmem:[#allocation2 + $0x30] sm:$0xff] }
 0x6be   :  { %3065 = vset.pattern.permute.xlu1 %v3341_v23 }
 0x6bf   :  { %2211 = vperm.xlu1 %3065, %v2078_v1  }
 0x6c4   :  { %v2083_v20 = vpop.f32.mrf.mxu0 }
 0x6c5   :  { %2215 = vperm.xlu1 %3065, %v2083_v20   ;;  %2183 = vperm.xlu0 %3064, %v2083_v20  }
 0x6c6   :  { %v2977_v33 = vpop.f32.mrf.mxu0 }
 0x6c8   :  { %v2088_v57 = vpop.f32.mrf.mxu0 }
 0x6c9   :  { %3066 = vset.pattern.permute.xlu1 %v4403_v39  ;;  %3068 = vset.pattern.permute.xlu0 %v3341_v23 }
 0x6ca   :  { %2188 = vperm.xlu1 %3066, %v2088_v57   ;;  %v2980_v52 = vpop.f32.mrf.mxu0 }
 0x6cc   :  { %v2093_v7 = vpop.f32.mrf.mxu0 }
 0x6ce   :  { %2193 = vperm.xlu1 %3066, %v2093_v7   ;;  %v2983_v31 = vpop.f32.mrf.mxu0 }
 0x6d0   :  { %v2098_v26 = vpop.f32.mrf.mxu0 }
 0x6d1   :  { %2227 = vperm.xlu0 %3068, %v2098_v26   ;;  %3000 = vmatprep.subr.mxu0 %v2098_v26 }
 0x6d2   :  { %2198 = vperm.xlu1 %3066, %v2098_v26   ;;  %v2986_v34 = vpop.f32.mrf.mxu0  ;;  %3001 = vmatpush3.msra.mxu0 %v2098_v26 }
 0x6d3   :  { %3002 = vmatprep.subr.mxu0 %v2093_v7 }
 0x6d4   :  { %3003 = vmatpush3.msra.mxu0 %v2093_v7 }
 0x6d5   :  { %3004 = vmatprep.subr.mxu0 %v2088_v57 }
 0x6d6   :  { %3067 = vset.pattern.permute.xlu1 %v3341_v23  ;;  %3005 = vmatpush3.msra.mxu0 %v2088_v57 }
 0x6d7   :  { %2219 = vperm.xlu1 %3067, %v2088_v57   ;;  %3006 = vmatprep.subr.mxu0 %v2083_v20 }
 0x6d8   :  { %3007 = vmatpush3.msra.mxu0 %v2083_v20 }
 0x6d9   :  { %3008 = vmatprep.subr.mxu0 %v2078_v1  ;;  %v2172_v15 = vpop.f32.mrf.mxu0 }
 0x6da   :  { %3009 = vmatpush3.msra.mxu0 %v2078_v1  ;;  %v2204_v37 = vrot.slane %v2172_v15, %v3429_v29  ;;  %v2233_v44 = vrot.slane %v2172_v15, %v4404_v50  ;;  %v2268_v15 = vld [vmem:[#allocation2 + $0x48] sm:$0xff] }
 0x6db   :  { %2223 = vperm.xlu1 %3067, %v2093_v7   ;;  %v2999_v16 = vpop.f32.mrf.mxu0  ;;  %v2266_v7 = vld [vmem:[#allocation2 + $0x38] sm:$0xff] }
 0x735   :  { %v2179_v21 = vpop.permute.xlu1 %2178 }
 0x736   :  { %v2205_v18 = vadd.f32 %v2204_v37, %v2179_v21 }
 0x738   :  { %v2239_v10 = vmul.f32 0.2, %v2205_v18 }
 0x73a   :  { %v2249_v27 = vmax.f32 %v2205_v18, %v2239_v10  ;;  %v2212_v30 = vpop.permute.xlu1 %2211  ;;  %v2267_v18 = vld [vmem:[#allocation2 + $0x40] sm:$0xff] }
 0x73b   :  { %v2234_v29 = vadd.f32 %v2233_v44, %v2212_v30 }
 0x73c   :  { %v4266_v46 = vadd.f32 %v2259_v48, %v2249_v27 }
 0x73d   :  { %v2244_v9 = vmul.f32 0.2, %v2234_v29 }
 0x73e   :  { %v2279_v43 = vsel %vm413_vm2, %v4266_v46, -inf }
 0x73f   :  { %2280 = vmax.xlane.f32.xlu1 %v2279_v43  ;;  %v2254_v53 = vmax.f32 %v2234_v29, %v2244_v9 }
 0x740   :  { %v2216_v63 = vpop.permute.xlu1 %2215  ;;  %v2184_v22 = vpop.permute.xlu0 %2183 }
 0x741   :  { %v2206_v56 = vadd.f32 %v2204_v37, %v2184_v22  ;;  %v2235_v8 = vadd.f32 %v2233_v44, %v2216_v63  ;;  %v2274_v28 = vadd.f32 %v2264_v42, %v2254_v53 }
 0x743   :  { %v2240_v12 = vmul.f32 0.2, %v2206_v56  ;;  %v2245_v0 = vmul.f32 0.2, %v2235_v8  ;;  %v2294_v57 = vsel %vm413_vm2, %v2274_v28, -inf }
 0x745   :  { %v2250_v40 = vmax.f32 %v2206_v56, %v2240_v12  ;;  %v2189_v41 = vpop.permute.xlu1 %2188  ;;  %v2255_v49 = vmax.f32 %v2235_v8, %v2245_v0 }
 0x746   :  { %v2207_v36 = vadd.f32 %v2204_v37, %v2189_v41 }
 0x747   :  { %v4271_v38 = vadd.f32 %v2260_v62, %v2250_v40  ;;  %v2275_v52 = vadd.f32 %v2265_v25, %v2255_v49 }
 0x748   :  { %v2241_v32 = vmul.f32 0.2, %v2207_v36 }
 0x749   :  { %v2194_v45 = vpop.permute.xlu1 %2193  ;;  %v2282_v47 = vsel %vm413_vm2, %v4271_v38, -inf  ;;  %v2297_v21 = vsel %vm413_vm2, %v2275_v52, -inf }
 0x74a   :  { %v2251_v60 = vmax.f32 %v2207_v36, %v2241_v32  ;;  %v2208_v59 = vadd.f32 %v2204_v37, %v2194_v45  ;;  %2283 = vmax.xlane.f32.xlu0 %v2282_v47 }
 0x74c   :  { %v2242_v2 = vmul.f32 0.2, %v2208_v59  ;;  %v2228_v13 = vpop.permute.xlu0 %2227  ;;  %v2271_v24 = vadd.f32 %v2261_v19, %v2251_v60 }
 0x74d   :  { %v2199_v61 = vpop.permute.xlu1 %2198  ;;  %v2238_v5 = vadd.f32 %v2233_v44, %v2228_v13 }
 0x74e   :  { %v2252_v17 = vmax.f32 %v2208_v59, %v2242_v2  ;;  %v2209_v51 = vadd.f32 %v2204_v37, %v2199_v61  ;;  %v2285_v54 = vsel %vm413_vm2, %v2271_v24, -inf }
 0x74f   :  { %2286 = vmax.xlane.f32.xlu1 %v2285_v54  ;;  %v2248_v11 = vmul.f32 0.2, %v2238_v5 }
 0x750   :  { %v2243_v55 = vmul.f32 0.2, %v2209_v51  ;;  %v2272_v35 = vadd.f32 %v2262_v6, %v2252_v17 }
 0x751   :  { %v2258_v31 = vmax.f32 %v2238_v5, %v2248_v11 }
 0x752   :  { %v2253_v14 = vmax.f32 %v2209_v51, %v2243_v55  ;;  %v2220_v3 = vpop.permute.xlu1 %2219  ;;  %v2288_v58 = vsel %vm413_vm2, %v2272_v35, -inf }
 0x753   :  { %v2236_v1 = vadd.f32 %v2233_v44, %v2220_v3  ;;  %2289 = vmax.xlane.f32.xlu0 %v2288_v58  ;;  %v2278_v27 = vadd.f32 %v2268_v15, %v2258_v31 }
 0x754   :  { %v2273_v23 = vadd.f32 %v2263_v4, %v2253_v14 }
 0x755   :  { %v2246_v20 = vmul.f32 0.2, %v2236_v1  ;;  %v2306_v43 = vsel %vm413_vm2, %v2278_v27, -inf }
 0x756   :  { %v2224_v33 = vpop.permute.xlu1 %2223  ;;  %v2291_v39 = vsel %vm413_vm2, %v2273_v23, -inf }
 0x757   :  { %v2256_v26 = vmax.f32 %v2236_v1, %v2246_v20  ;;  %v2237_v34 = vadd.f32 %v2233_v44, %v2224_v33  ;;  %2295 = vmax.xlane.f32.xlu0 %v2294_v57  ;;  %2292 = vmax.xlane.f32.xlu1 %v2291_v39 }
 0x759   :  { %v2247_v16 = vmul.f32 0.2, %v2237_v34  ;;  %v2276_v37 = vadd.f32 %v2266_v7, %v2256_v26 }
 0x75b   :  { %v2257_v10 = vmax.f32 %v2237_v34, %v2247_v16  ;;  %2298 = vmax.xlane.f32.xlu1 %v2297_v21  ;;  %v2300_v48 = vsel %vm413_vm2, %v2276_v37, -inf }
 0x75c   :  { %2301 = vmax.xlane.f32.xlu0 %v2300_v48 }
 0x75d   :  { %v2277_v30 = vadd.f32 %v2267_v18, %v2257_v10 }
 0x75f   :  { %v2303_v63 = vsel %vm413_vm2, %v2277_v30, -inf }
 0x760   :  { %2307 = vmax.xlane.f32.xlu0 %v2306_v43  ;;  %2304 = vmax.xlane.f32.xlu1 %v2303_v63 }
 0x7c8   :  { %v2281_v22 = vpop.xlane.xlu1 %2280 }
 0x7c9   :  { %v2309_v50 = vsub.f32 %v4266_v46, %v2281_v22 }
 0x7cb   :  { %v2319_v44 = vmul.f32 1.442695, %v2309_v50 }
 0x7cd   :  { %3249 = vpow2.f32 %v2319_v44 }
 0x7d3   :  { %v2284_v56 = vpop.xlane.xlu0 %2283 }
 0x7d4   :  { %v2310_v12 = vsub.f32 %v4271_v38, %v2284_v56 }
 0x7d6   :  { %v2321_v62 = vmul.f32 1.442695, %v2310_v12 }
 0x7d8   :  { %3251 = vpow2.f32 %v2321_v62  ;;  %v2287_v29 = vpop.xlane.xlu1 %2286 }
 0x7d9   :  { %v2311_v40 = vsub.f32 %v2271_v24, %v2287_v29 }
 0x7da   :  { %v3250_v41 = vpop.eup %3249 }
 0x7db   :  { %v2323_v36 = vmul.f32 1.442695, %v2311_v40  ;;  %3010 = vmatprep.mubr.msk.f32.mxu0 %vm413_vm2, %v3250_v41  ;;  %v2339_v57 = vsel %vm413_vm2, %v3250_v41, 0.0 }
 0x7dc   :  { %v2290_v32 = vpop.xlane.xlu0 %2289 }
 0x7dd   :  { %3253 = vpow2.f32 %v2323_v36  ;;  %v2312_v9 = vsub.f32 %v2272_v35, %v2290_v32 }
 0x7df   :  { %v2325_v45 = vmul.f32 1.442695, %v2312_v9 }
 0x7e0   :  { %v2296_v47 = vpop.xlane.xlu0 %2295  ;;  %v2293_v19 = vpop.xlane.xlu1 %2292 }
 0x7e1   :  { %3255 = vpow2.f32 %v2325_v45  ;;  %v2314_v46 = vsub.f32 %v2274_v28, %v2296_v47  ;;  %v2313_v8 = vsub.f32 %v2273_v23, %v2293_v19 }
 0x7e3   :  { %v2329_v60 = vmul.f32 1.442695, %v2314_v46  ;;  %v2327_v59 = vmul.f32 1.442695, %v2313_v8 }
 0x7e4   :  { %v2299_v38 = vpop.xlane.xlu1 %2298 }
 0x7e5   :  { %v3252_v2 = vpop.eup %3251  ;;  %3257 = vpow2.f32 %v2329_v60  ;;  %v2315_v13 = vsub.f32 %v2275_v52, %v2299_v38  ;;  %v2302_v24 = vpop.xlane.xlu0 %2301 }
 0x7e6   :  { %3259 = vpow2.f32 %v2327_v59  ;;  %v2316_v53 = vsub.f32 %v2276_v37, %v2302_v24  ;;  %3011 = vmatmul.mubr.msk.f32.vlgmr.msra.gmra.mxu0 %vm413_vm2, %v3252_v2  ;;  %v2342_v33 = vsel %vm413_vm2, %v3252_v2, 0.0 }
 0x7e7   :  { %v2331_v61 = vmul.f32 1.442695, %v2315_v13 }
 0x7e8   :  { %v2333_v6 = vmul.f32 1.442695, %v2316_v53 }
 0x7e9   :  { %3261 = vpow2.f32 %v2331_v61  ;;  %v2308_v0 = vpop.xlane.xlu0 %2307  ;;  %v2305_v17 = vpop.xlane.xlu1 %2304 }
 0x7ea   :  { %v3254_v51 = vpop.eup %3253  ;;  %3263 = vpow2.f32 %v2333_v6  ;;  %v2318_v54 = vsub.f32 %v2278_v27, %v2308_v0  ;;  %v2317_v5 = vsub.f32 %v2277_v30, %v2305_v17 }
 0x7eb   :  { %3013 = vmatprep.mubr.msk.f32.mxu0 %vm413_vm2, %v3254_v51  ;;  %v2345_v52 = vsel %vm413_vm2, %v3254_v51, 0.0 }
 0x7ec   :  { %v2337_v42 = vmul.f32 1.442695, %v2318_v54  ;;  %v2335_v55 = vmul.f32 1.442695, %v2317_v5 }
 0x7ee   :  { %v3256_v35 = vpop.eup %3255  ;;  %3265 = vpow2.f32 %v2337_v42 }
 0x7ef   :  { %3267 = vpow2.f32 %v2335_v55  ;;  %3014 = vmatmul.mubr.msk.f32.gmra.mxu0 %vm413_vm2, %v3256_v35  ;;  %v2348_v39 = vsel %vm413_vm2, %v3256_v35, 0.0 }
 0x7f2   :  { %v3258_v4 = vpop.eup %3257 }
 0x7f3   :  { %v3260_v49 = vpop.eup %3259  ;;  %v2354_v14 = vsel %vm413_vm2, %v3258_v4, 0.0 }
 0x7f4   :  { %3016 = vmatprep.mubr.msk.f32.mxu0 %vm413_vm2, %v3260_v49  ;;  %2355 = vadd.xlane.f32.xlu1 %v2354_v14  ;;  %v2351_v7 = vsel %vm413_vm2, %v3260_v49, 0.0 }
 0x7f5   :  { %3017 = vmatmul.mubr.msk.f32.gmra.mxu0 %vm413_vm2, %v3258_v4 }
 0x7f6   :  { %v3262_v3 = vpop.eup %3261 }
 0x7f7   :  { %v3264_v58 = vpop.eup %3263  ;;  %3019 = vmatprep.mubr.msk.f32.mxu0 %vm413_vm2, %v3262_v3  ;;  %v2357_v28 = vsel %vm413_vm2, %v3262_v3, 0.0 }
 0x7f8   :  { %2358 = vadd.xlane.f32.xlu0 %v2357_v28  ;;  %v2360_v11 = vsel %vm413_vm2, %v3264_v58, 0.0 }
 0x7f9   :  { %3020 = vmatmul.mubr.msk.f32.gmra.mxu0 %vm413_vm2, %v3264_v58  ;;  %2361 = vadd.xlane.f32.xlu1 %v2360_v11 }
 0x7fb   :  { %v3266_v1 = vpop.eup %3265 }
 0x7fc   :  { %v3268_v25 = vpop.eup %3267  ;;  %v2366_v23 = vsel %vm413_vm2, %v3266_v1, 0.0 }
 0x7fd   :  { %3022 = vmatprep.mubr.msk.f32.mxu0 %vm413_vm2, %v3268_v25  ;;  %2367 = vadd.xlane.f32.xlu1 %v2366_v23  ;;  %v2363_v20 = vsel %vm413_vm2, %v3268_v25, 0.0 }
 0x7fe   :  { %3023 = vmatmul.mubr.msk.f32.gmra.mxu0 %vm413_vm2, %v3266_v1  ;;  %2364 = vadd.xlane.f32.xlu0 %v2363_v20 }
 0x801   :  { %2343 = vadd.xlane.f32.xlu1 %v2342_v33 }
 0x802   :  { %2340 = vadd.xlane.f32.xlu0 %v2339_v57 }
 0x805   :  { %2349 = vadd.xlane.f32.xlu1 %v2348_v39 }
 0x806   :  { %2346 = vadd.xlane.f32.xlu0 %v2345_v52 }
 0x80a   :  { %2352 = vadd.xlane.f32.xlu0 %v2351_v7 }
 0x87d   :  { %v2356_v31 = vpop.xlane.xlu1 %2355 }
 0x87e   :  { %v2374_v26 = vmax.f32 %v2356_v31, 1e-30 }
 0x880   :  { %3269 = vrcp.f32 %v2374_v26 }
 0x881   :  { %v2359_v15 = vpop.xlane.xlu0 %2358 }
 0x882   :  { %v2362_v34 = vpop.xlane.xlu1 %2361  ;;  %v2375_v37 = vmax.f32 %v2359_v15, 1e-30 }
 0x883   :  { %v2376_v16 = vmax.f32 %v2362_v34, 1e-30 }
 0x885   :  { %3271 = vrcp.f32 %v2376_v16 }
 0x886   :  { %v2368_v21 = vpop.xlane.xlu1 %2367  ;;  %3273 = vrcp.f32 %v2375_v37 }
 0x887   :  { %v2365_v18 = vpop.xlane.xlu0 %2364  ;;  %v2378_v10 = vmax.f32 %v2368_v21, 1e-30 }
 0x888   :  { %v2377_v48 = vmax.f32 %v2365_v18, 1e-30 }
 0x889   :  { %3275 = vrcp.f32 %v2378_v10 }
 0x88a   :  { %3277 = vrcp.f32 %v2377_v48  ;;  %v2344_v4 = vpop.xlane.xlu1 %2343 }
 0x88b   :  { %v2341_v42 = vpop.xlane.xlu0 %2340  ;;  %v2370_v14 = vmax.f32 %v2344_v4, 1e-30 }
 0x88c   :  { %v2369_v55 = vmax.f32 %v2341_v42, 1e-30 }
 0x88d   :  { %v3270_v27 = vpop.eup %3269 }
 0x88e   :  { %v2394_v43 = vmul.f32 %v3270_v27, %v2374_v26  ;;  %3279 = vrcp.f32 %v2369_v55  ;;  %v2350_v58 = vpop.xlane.xlu1 %2349 }
 0x88f   :  { %v2347_v35 = vpop.xlane.xlu0 %2346  ;;  %v2372_v11 = vmax.f32 %v2350_v58, 1e-30 }
 0x890   :  { %v2404_v56 = vsub.f32 2.0, %v2394_v43  ;;  %v2371_v49 = vmax.f32 %v2347_v35, 1e-30 }
 0x892   :  { %v3272_v63 = vpop.eup %3271  ;;  %v2414_v32 = vmul.f32 %v3270_v27, %v2404_v56  ;;  %3281 = vrcp.f32 %v2371_v49 }
 0x893   :  { %v3274_v50 = vpop.eup %3273  ;;  %v2396_v12 = vmul.f32 %v3272_v63, %v2376_v16  ;;  %v2353_v3 = vpop.xlane.xlu0 %2352  ;;  %3283 = vrcp.f32 %v2370_v14 }
 0x894   :  { %v2395_v40 = vmul.f32 %v3274_v50, %v2375_v37  ;;  %v2373_v28 = vmax.f32 %v2353_v3, 1e-30 }
 0x895   :  { %v2406_v36 = vsub.f32 2.0, %v2396_v12 }
 0x896   :  { %v3276_v29 = vpop.eup %3275  ;;  %v2405_v47 = vsub.f32 2.0, %v2395_v40  ;;  %3285 = vrcp.f32 %v2373_v28 }
 0x897   :  { %v3278_v41 = vpop.eup %3277  ;;  %v2398_v9 = vmul.f32 %v3276_v29, %v2378_v10  ;;  %v2416_v60 = vmul.f32 %v3272_v63, %v2406_v36  ;;  %3287 = vrcp.f32 %v2372_v11 }
 0x898   :  { %v2397_v46 = vmul.f32 %v3278_v41, %v2377_v48  ;;  %v2415_v13 = vmul.f32 %v3274_v50, %v2405_v47 }
 0x899   :  { %v2408_v59 = vsub.f32 2.0, %v2398_v9 }
 0x89a   :  { %v2407_v24 = vsub.f32 2.0, %v2397_v46 }
 0x89b   :  { %v2418_v6 = vmul.f32 %v3276_v29, %v2408_v59  ;;  %v3280_v1 = vpop.eup %3279 }
 0x89c   :  { %v2417_v51 = vmul.f32 %v3278_v41, %v2407_v24  ;;  %v2389_v25 = vmul.f32 %v3280_v1, %v2369_v55 }
 0x89e   :  { %v2399_v33 = vsub.f32 2.0, %v2389_v25 }
 0x89f   :  { %v3282_v23 = vpop.eup %3281 }
 0x8a0   :  { %v3284_v20 = vpop.eup %3283  ;;  %v2391_v57 = vmul.f32 %v3282_v23, %v2371_v49  ;;  %v2409_v26 = vmul.f32 %v3280_v1, %v2399_v33 }
 0x8a1   :  { %v2390_v39 = vmul.f32 %v3284_v20, %v2370_v14 }
 0x8a2   :  { %v2401_v31 = vsub.f32 2.0, %v2391_v57 }
 0x8a3   :  { %v3286_v52 = vpop.eup %3285  ;;  %v2400_v34 = vsub.f32 2.0, %v2390_v39 }
 0x8a4   :  { %v3288_v7 = vpop.eup %3287  ;;  %v2393_v15 = vmul.f32 %v3286_v52, %v2373_v28  ;;  %v2411_v18 = vmul.f32 %v3282_v23, %v2401_v31 }
 0x8a5   :  { %v2392_v37 = vmul.f32 %v3288_v7, %v2372_v11  ;;  %v2410_v27 = vmul.f32 %v3284_v20, %v2400_v34 }
 0x8a6   :  { %v4305_v30 = vpop.f32.mrf.mxu0  ;;  %v2403_v48 = vsub.f32 2.0, %v2393_v15 }
 0x8a7   :  { %v2402_v50 = vsub.f32 2.0, %v2392_v37  ;;  %v2565_v12 = vmul.f32 %v4305_v30, %v2410_v27 }
 0x8a8   :  { %v4307_v22 = vpop.f32.mrf.mxu0  ;;  %v2413_v40 = vmul.f32 %v3286_v52, %v2403_v48 }
 0x8a9   :  { %v2564_v16 = vmul.f32 %v4307_v22, %v2409_v26 }
 0x8af   :  { %v4309_v44 = vpop.f32.mrf.mxu0 }
 0x8b1   :  { %v4311_v62 = vpop.f32.mrf.mxu0 }
 0x8b2   :  { %v2566_v43 = vmul.f32 %v4311_v62, %v2411_v18 }
 0x8b5   :  { %v3018_v45 = vpop.f32.mrf.mxu0 }
 0x8b6   :  { %v2569_v19 = vmul.f32 %v3018_v45, %v2414_v32  ;;  %v2412_v32 = vmul.f32 %v3288_v7, %v2402_v50 }
 0x8b7   :  { %v4313_v8 = vpop.f32.mrf.mxu0 }
 0x8b8   :  { %2579 = vrot.lane.b32.xlu1 %v2569_v19, %s3342_s0  ;;  %v2568_v9 = vmul.f32 %v4313_v8, %v2413_v40  ;;  %v2567_v30 = vmul.f32 %v4309_v44, %v2412_v32 }
 0x8b9   :  { %v3021_v38 = vpop.f32.mrf.mxu0 }
 0x8ba   :  { %v2571_v2 = vmul.f32 %v3021_v38, %v2416_v60 }
 0x8bb   :  { %v2545_v53 = vpop.f32.mrf.mxu0 }
 0x8bc   :  { %v2570_v61 = vmul.f32 %v2545_v53, %v2415_v13  ;;  %2583 = vrot.lane.b32.xlu1 %v2571_v2, %s3342_s0 }
 0x8be   :  { %2581 = vrot.lane.b32.xlu0 %v2570_v61, %s3342_s0  ;;  %v3024_v0 = vpop.f32.mrf.mxu0 }
 0x8bf   :  { %v2573_v17 = vmul.f32 %v3024_v0, %v2418_v6 }
 0x8c0   :  { %v2555_v54 = vpop.f32.mrf.mxu0 }
 0x8c1   :  { %v2572_v5 = vmul.f32 %v2555_v54, %v2417_v51 }
 0x8c2   :  { %2587 = vrot.lane.b32.xlu0 %v2573_v17, %s3342_s0 }
 0x8c3   :  { %2585 = vrot.lane.b32.xlu1 %v2572_v5, %s3342_s0 }
 0x92a   :  { %v2580_v21 = vpop.permute.xlu1 %2579 }
 0x92b   :  { %v2594_v10 = vadd.f32 %v2580_v21, %v2564_v16 }
 0x92d   :  { %v2599_v63 = vmul.f32 0.5, %v2594_v10 }
 0x92e   :  { %v2584_v56 = vpop.permute.xlu1 %2583 }
 0x92f   :  { %2605 = vst.msk [vmem:[%s4342_s2] sm:$0xff] %vm2604_vm14, %v2599_v63  ;;  %v2596_v22 = vadd.f32 %v2584_v56, %v2566_v43 }
 0x930   :  { %v2582_v29 = vpop.permute.xlu0 %2581 }
 0x931   :  { %v2601_v41 = vmul.f32 0.5, %v2596_v22  ;;  %v2595_v36 = vadd.f32 %v2582_v29, %v2565_v12 }
 0x933   :  { %2607 = vst.msk [vmem:[%s4342_s2 + $0x10] sm:$0xff] %vm2604_vm14, %v2601_v41  ;;  %v2600_v62 = vmul.f32 0.5, %v2595_v36 }
 0x934   :  { %v2588_v45 = vpop.permute.xlu0 %2587 }
 0x935   :  { %2606 = vst.msk [vmem:[%s4342_s2 + $0x8] sm:$0xff] %vm2604_vm14, %v2600_v62  ;;  %v2598_v47 = vadd.f32 %v2588_v45, %v2568_v9  ;;  %v2586_v19 = vpop.permute.xlu1 %2585 }
 0x936   :  { %v2597_v46 = vadd.f32 %v2586_v19, %v2567_v30 }
 0x937   :  { %v2603_v60 = vmul.f32 0.5, %v2598_v47 }
 0x938   :  { %v2602_v59 = vmul.f32 0.5, %v2597_v46 }
 0x939   :  { %2609 = vst.msk [vmem:[%s4342_s2 + $0x20] sm:$0xff] %vm2604_vm14, %v2603_v60 }
 0x93a   :  { %2608 = vst.msk [vmem:[%s4342_s2 + $0x18] sm:$0xff] %vm2604_vm14, %v2602_v59 }
 0x93b   :  { %2614 = vsyncpa [#allocation3], 1 }

</bundles_post_ra>
